<compile_context>
chip_gen: v7x
topology: tpu7x:2x2x1
jax: 0.10.0
libtpu: 0.0.40
codegen_flags: <defaults>
</compile_context>

<pallas_src>
import functools
import math

import jax
import jax.numpy as jnp
from jax.experimental import pallas as pl
from jax.experimental.pallas import tpu as pltpu


# -----------------------------------------------------------------------------
# Static layer table: name -> (slab, row_offset, padded_in_rows, bias_row).
# The slab's lane width is the (padded) output width of the layer.
# All row offsets / counts are multiples of 8 (sublane aligned).
# -----------------------------------------------------------------------------
_LAYERS = {
    "enc1":   ("w128",    0, 128,  0),   # 90->128   (in padded 90->128)
    "enc2":   ("w128",  128, 128,  1),   # 128->128
    "enc3":   ("w256",    0, 128,  2),   # 128->256
    "enc4":   ("w256",  128, 256,  3),   # 256->256
    "enc5":   ("w512",    0, 256,  4),   # 256->512
    "muvar":  ("w128",  256, 512,  5),   # 512->64 (mu|logvar), padded to 128
    "posty1": ("w128",  768, 128,  6),   # 90->64, padded to 128x128
    "posty2": ("w128",  896, 128,  7),   # 64->32, padded to 128x128
    "fus1":   ("w256",  384,  64,  8),   # 64->256
    "fus2":   ("w512",  256, 256,  9),   # 256->512
    "dec1":   ("w256",  448, 512, 10),   # 512->256
    "dec2":   ("w256",  960, 256, 11),   # 256->256
    "dec3":   ("w128", 1024, 256, 12),   # 256->128
    "dec4":   ("w128", 1280, 128, 13),   # 128->128
    "dec5":   ("w128", 1408, 128, 14),   # 128->90, padded to 128
}
_SLAB_SHAPES = {"w128": (1536, 128), "w256": (1216, 256), "w512": (512, 512)}
_N_BIAS_ROWS = 16
_BIAS_COLS = 512


def _round_up(n, m):
    return (n + m - 1) // m * m


# -----------------------------------------------------------------------------
# Kernel
# -----------------------------------------------------------------------------
def mlp_reconstruct_kernel(x_ref, y_ref, eps_ref,
                           w128_ref, w256_ref, w512_ref, b_ref,
                           out_ref, ml_ref):
    slabs = {"w128": w128_ref, "w256": w256_ref, "w512": w512_ref}

    def lin(h, name):
        slab, r0, rows, brow = _LAYERS[name]
        w = slabs[slab][r0:r0 + rows, :]                       # bf16 (rows, ow)
        ow = w.shape[1]
        acc = jnp.dot(h.astype(jnp.bfloat16), w,
                      preferred_element_type=jnp.float32)       # f32 accumulate
        return acc + b_ref[brow:brow + 1, :ow]                  # f32 bias add

    x = x_ref[...]                         # [TB,128] f32 (cols 90: zero)
    y = y_ref[...]                         # [TB,128] f32 (cols 90: zero)
    eps = eps_ref[...]                     # [TB,32]  f32

    # ---- Encoder (Dropout = identity in eval mode) ----
    h = lin(x, "enc1")
    h = lin(h, "enc2")
    h = lin(h, "enc3")
    h = lin(h, "enc4")
    latent = lin(h, "enc5")                # [TB,512]

    # ---- fused fc_mu | fc_var ----
    ml = lin(latent, "muvar")              # [TB,128]: mu | logvar | zeros
    mu = ml[:, :32]
    logvar = ml[:, 32:64]

    # ---- reparameterize: z = eps * exp(0.5*logvar) + mu (kept in f32) ----
    z = eps * jnp.exp(0.5 * logvar) + mu   # [TB,32]

    # ---- Posterior_Y_embedding ----
    yh = lin(y, "posty1")                  # [TB,128] (cols 64: zero)
    post_y = lin(yh, "posty2")[:, :32]     # [TB,32]

    # ---- fusion_z_posterior: single concat matmul ----
    f_in = jnp.concatenate([z, post_y], axis=1)    # [TB,64]
    f = lin(f_in, "fus1")                  # [TB,256]
    zf = lin(f, "fus2")                    # [TB,512]

    # ---- Decoder ----
    d = lin(zf, "dec1")
    d = lin(d, "dec2")
    d = lin(d, "dec3")
    d = lin(d, "dec4")
    out = lin(d, "dec5")                   # [TB,128] (cols 90: zero)

    out_ref[...] = out
    ml_ref[...] = ml


# -----------------------------------------------------------------------------
# Parameter construction / packing
# -----------------------------------------------------------------------------
def _init_linear(key, in_f, out_f):
    """Deterministic init mimicking PyTorch Linear default (uniform +-1/sqrt(in))."""
    kw, kb = jax.random.split(key)
    bound = 1.0 / math.sqrt(in_f)
    w = jax.random.uniform(kw, (in_f, out_f), jnp.float32, -bound, bound)  # (in, out)
    b = jax.random.uniform(kb, (1, out_f), jnp.float32, -bound, bound)
    return w, b


def build_params(seed=0):
    key = jax.random.PRNGKey(seed)
    dims = {
        "enc": [(90, 128), (128, 128), (128, 256), (256, 256), (256, 512)],
        "mu": [(512, 32)],
        "var": [(512, 32)],
        "posty": [(90, 64), (64, 32)],
        "fusion": [(64, 256), (256, 512)],
        "dec": [(512, 256), (256, 256), (256, 128), (128, 128), (128, 90)],
    }
    params = {}
    for name, layer_dims in dims.items():
        layers = []
        for (i, o) in layer_dims:
            key, sub = jax.random.split(key)
            layers.append(_init_linear(sub, i, o))
        params[name] = layers
    return params


def pack_params(params):
    """Pack per-layer (w, b) into 3 bf16 weight slabs + 1 f32 bias matrix."""
    (we1, be1), (we2, be2), (we3, be3), (we4, be4), (we5, be5) = params["enc"]
    (wmu, bmu), = params["mu"]
    (wvar, bvar), = params["var"]
    (wy1, by1), (wy2, by2) = params["posty"]
    (wf1, bf1), (wf2, bf2) = params["fusion"]
    (wd1, bd1), (wd2, bd2), (wd3, bd3), (wd4, bd4), (wd5, bd5) = params["dec"]

    wmv = jnp.concatenate([wmu, wvar], axis=1)     # (512, 64)
    bmv = jnp.concatenate([bmu, bvar], axis=1)     # (1, 64)

    layer_wb = {
        "enc1": (we1, be1), "enc2": (we2, be2), "enc3": (we3, be3),
        "enc4": (we4, be4), "enc5": (we5, be5),
        "muvar": (wmv, bmv),
        "posty1": (wy1, by1), "posty2": (wy2, by2),
        "fus1": (wf1, bf1), "fus2": (wf2, bf2),
        "dec1": (wd1, bd1), "dec2": (wd2, bd2), "dec3": (wd3, bd3),
        "dec4": (wd4, bd4), "dec5": (wd5, bd5),
    }

    slabs = {k: jnp.zeros(s, jnp.float32) for k, s in _SLAB_SHAPES.items()}
    bias = jnp.zeros((_N_BIAS_ROWS, _BIAS_COLS), jnp.float32)
    for name, (w, b) in layer_wb.items():
        slab, r0, _rows, brow = _LAYERS[name]
        i_f, o_f = w.shape
        slabs[slab] = slabs[slab].at[r0:r0 + i_f, :o_f].set(w)
        bias = bias.at[brow, :o_f].set(b[0])

    return (slabs["w128"].astype(jnp.bfloat16),
            slabs["w256"].astype(jnp.bfloat16),
            slabs["w512"].astype(jnp.bfloat16),
            bias)


# -----------------------------------------------------------------------------
# Wrapper
# -----------------------------------------------------------------------------
@functools.partial(jax.jit, static_argnames=("batch_tile",))
def mlp_reconstruct_forward(x, y, eps, packed, batch_tile=None):
    w128, w256, w512, bias = packed
    B = x.shape[0]
    tb = batch_tile if batch_tile is not None else min(128, _round_up(B, 8))
    bp = _round_up(B, tb)
    nb = bp // tb

    def pad2d(a, rows, cols):
        return jnp.zeros((rows, cols), jnp.float32).at[:a.shape[0], :a.shape[1]].set(a)

    xp = pad2d(x, bp, 128)
    yp = pad2d(y, bp, 128)
    ep = pad2d(eps, bp, 32)

    w_bytes = (w128.size + w256.size + w512.size) * 2 + bias.size * 4
    cost = pl.CostEstimate(
        flops=2 * bp * sum(r * c for r, c in _SLAB_SHAPES.values()),
        transcendentals=bp * 32,
        bytes_accessed=w_bytes + bp * (128 + 128 + 32 + 128 + 128) * 4,
    )

    def full_spec(shape):
        return pl.BlockSpec(shape, lambda i: (0, 0))

    out, ml = pl.pallas_call(
        mlp_reconstruct_kernel,
        grid=(nb,),
        in_specs=[
            pl.BlockSpec((tb, 128), lambda i: (i, 0)),     # x
            pl.BlockSpec((tb, 128), lambda i: (i, 0)),     # y
            pl.BlockSpec((tb, 32), lambda i: (i, 0)),      # eps
            full_spec(_SLAB_SHAPES["w128"]),               # weight slab 128
            full_spec(_SLAB_SHAPES["w256"]),               # weight slab 256
            full_spec(_SLAB_SHAPES["w512"]),               # weight slab 512
            full_spec((_N_BIAS_ROWS, _BIAS_COLS)),         # bias matrix
        ],
        out_specs=(
            pl.BlockSpec((tb, 128), lambda i: (i, 0)),     # reconstruction (padded)
            pl.BlockSpec((tb, 128), lambda i: (i, 0)),     # mu | logvar (padded)
        ),
        out_shape=(
            jax.ShapeDtypeStruct((bp, 128), jnp.float32),
            jax.ShapeDtypeStruct((bp, 128), jnp.float32),
        ),
        compiler_params=pltpu.CompilerParams(
            dimension_semantics=("parallel",),
            vmem_limit_bytes=16 << 20,
        ),
        cost_estimate=cost,
    )(xp, yp, ep, w128, w256, w512, bias)

    output = out[:B, :90]
    mu = ml[:B, :32]
    logvar = ml[:B, 32:64]
    return output, mu, logvar


# -----------------------------------------------------------------------------
# Pure-JAX reference (same bf16-operand / f32-accumulate numerics as the kernel)
# -----------------------------------------------------------------------------
def reference_forward(x, y, eps, params):
    def lin(h, w, b):
        return jnp.dot(h.astype(jnp.bfloat16), w.astype(jnp.bfloat16),
                       preferred_element_type=jnp.float32) + b

    def seq(h, layers):
        for w, b in layers:
            h = lin(h, w, b)
        return h

    latent = seq(x, params["enc"])
    mu = seq(latent, params["mu"])
    logvar = seq(latent, params["var"])
    z = eps * jnp.exp(0.5 * logvar) + mu
    post_y = seq(y, params["posty"])
    zc = jnp.concatenate([z, post_y], axis=1)
    zf = seq(zc, params["fusion"])
    out = seq(zf, params["dec"])
    return out, mu, logvar


if __name__ == "__main__":
    B = 8
    key = jax.random.PRNGKey(0)
    kx, ky, keps = jax.random.split(key, 3)
    x = jax.random.normal(kx, (B, 90), jnp.float32)
    y = jax.random.normal(ky, (B, 90), jnp.float32)
    eps = jax.random.normal(keps, (B, 32), jnp.float32)  # torch.randn_like(std) equivalent

    params = build_params(seed=0)
    packed = pack_params(params)

    out, mu, logvar = mlp_reconstruct_forward(x, y, eps, packed)
    jax.block_until_ready((out, mu, logvar))

    ref_out, ref_mu, ref_lv = reference_forward(x, y, eps, params)
    assert out.shape == (B, 90) and mu.shape == (B, 32) and logvar.shape == (B, 32)
    assert jnp.allclose(out, ref_out, atol=1e-3, rtol=1e-2)
    assert jnp.allclose(mu, ref_mu, atol=1e-3, rtol=1e-2)
    assert jnp.allclose(logvar, ref_lv, atol=1e-3, rtol=1e-2)

    print("KERNEL_OK")
</pallas_src>

<mosaic_0001>
module attributes {stable_mosaic.version = 11 : i64} {
  func.func @mlp_reconstruct_kernel(%arg0: i32, %arg1: memref<8x128xf32, #tpu.memory_space<vmem>>, %arg2: memref<8x128xf32, #tpu.memory_space<vmem>>, %arg3: memref<8x32xf32, #tpu.memory_space<vmem>>, %arg4: memref<1536x128xbf16, #tpu.memory_space<vmem>>, %arg5: memref<1216x256xbf16, #tpu.memory_space<vmem>>, %arg6: memref<512x512xbf16, #tpu.memory_space<vmem>>, %arg7: memref<16x512xf32, #tpu.memory_space<vmem>>, %arg8: memref<8x128xf32, #tpu.memory_space<vmem>>, %arg9: memref<8x128xf32, #tpu.memory_space<vmem>>) attributes {dimension_semantics = [#tpu.dimension_semantics<parallel>], iteration_bounds = array<i64: 1>, scalar_prefetch = 0 : i64, scratch_operands = 0 : i64, tpu.core_type = #tpu.core_type<tc>, window_params = [{transform_indices = @transform_0, window_bounds = array<i64: 8, 128>}, {transform_indices = @transform_1, window_bounds = array<i64: 8, 128>}, {transform_indices = @transform_2, window_bounds = array<i64: 8, 32>}, {pipeline_mode = #tpu.pipeline_mode<synchronous>, transform_indices = @transform_3, window_bounds = array<i64: 1536, 128>}, {pipeline_mode = #tpu.pipeline_mode<synchronous>, transform_indices = @transform_4, window_bounds = array<i64: 1216, 256>}, {pipeline_mode = #tpu.pipeline_mode<synchronous>, transform_indices = @transform_5, window_bounds = array<i64: 512, 512>}, {pipeline_mode = #tpu.pipeline_mode<synchronous>, transform_indices = @transform_6, window_bounds = array<i64: 16, 512>}, {transform_indices = @transform_7, window_bounds = array<i64: 8, 128>}, {transform_indices = @transform_8, window_bounds = array<i64: 8, 128>}]} {
    %c0 = arith.constant 0 : index
    %c0_0 = arith.constant 0 : index
    %0 = vector.load %arg1[%c0, %c0_0] : memref<8x128xf32, #tpu.memory_space<vmem>>, vector<8x128xf32>
    %c0_1 = arith.constant 0 : index
    %c0_2 = arith.constant 0 : index
    %1 = vector.load %arg2[%c0_1, %c0_2] : memref<8x128xf32, #tpu.memory_space<vmem>>, vector<8x128xf32>
    %c0_3 = arith.constant 0 : index
    %c0_4 = arith.constant 0 : index
    %2 = vector.load %arg3[%c0_3, %c0_4] : memref<8x32xf32, #tpu.memory_space<vmem>>, vector<8x32xf32>
    %c0_5 = arith.constant 0 : index
    %c0_6 = arith.constant 0 : index
    %3 = vector.load %arg4[%c0_5, %c0_6] : memref<1536x128xbf16, #tpu.memory_space<vmem>>, vector<128x128xbf16>
    %4 = arith.truncf %0 : vector<8x128xf32> to vector<8x128xbf16>
    %cst = arith.constant dense<0.000000e+00> : vector<8x128xf32>
    %5 = tpu.matmul %4, %3, %cst {dimension_numbers = #tpu.dot_dimension_numbers<[1], [0], [0], [1], [0, 0, 1, 1], [], []>} : vector<8x128xbf16>, vector<128x128xbf16>, vector<8x128xf32> -> vector<8x128xf32>
    %c0_7 = arith.constant 0 : index
    %c0_8 = arith.constant 0 : index
    %6 = vector.load %arg7[%c0_7, %c0_8] : memref<16x512xf32, #tpu.memory_space<vmem>>, vector<1x128xf32>
    %7 = vector.broadcast %6 : vector<1x128xf32> to vector<8x128xf32>
    %8 = arith.addf %5, %7 : vector<8x128xf32>
    %c128 = arith.constant 128 : index
    %c0_9 = arith.constant 0 : index
    %9 = vector.load %arg4[%c128, %c0_9] : memref<1536x128xbf16, #tpu.memory_space<vmem>>, vector<128x128xbf16>
    %10 = arith.truncf %8 : vector<8x128xf32> to vector<8x128xbf16>
    %cst_10 = arith.constant dense<0.000000e+00> : vector<8x128xf32>
    %11 = tpu.matmul %10, %9, %cst_10 {dimension_numbers = #tpu.dot_dimension_numbers<[1], [0], [0], [1], [0, 0, 1, 1], [], []>} : vector<8x128xbf16>, vector<128x128xbf16>, vector<8x128xf32> -> vector<8x128xf32>
    %c1 = arith.constant 1 : index
    %c0_11 = arith.constant 0 : index
    %12 = vector.load %arg7[%c1, %c0_11] : memref<16x512xf32, #tpu.memory_space<vmem>>, vector<1x128xf32>
    %13 = vector.broadcast %12 : vector<1x128xf32> to vector<8x128xf32>
    %14 = arith.addf %11, %13 : vector<8x128xf32>
    %c0_12 = arith.constant 0 : index
    %c0_13 = arith.constant 0 : index
    %15 = vector.load %arg5[%c0_12, %c0_13] : memref<1216x256xbf16, #tpu.memory_space<vmem>>, vector<128x256xbf16>
    %16 = arith.truncf %14 : vector<8x128xf32> to vector<8x128xbf16>
    %cst_14 = arith.constant dense<0.000000e+00> : vector<8x256xf32>
    %17 = tpu.matmul %16, %15, %cst_14 {dimension_numbers = #tpu.dot_dimension_numbers<[1], [0], [0], [1], [0, 0, 1, 1], [], []>} : vector<8x128xbf16>, vector<128x256xbf16>, vector<8x256xf32> -> vector<8x256xf32>
    %c2 = arith.constant 2 : index
    %c0_15 = arith.constant 0 : index
    %18 = vector.load %arg7[%c2, %c0_15] : memref<16x512xf32, #tpu.memory_space<vmem>>, vector<1x256xf32>
    %19 = vector.broadcast %18 : vector<1x256xf32> to vector<8x256xf32>
    %20 = arith.addf %17, %19 : vector<8x256xf32>
    %c128_16 = arith.constant 128 : index
    %c0_17 = arith.constant 0 : index
    %21 = vector.load %arg5[%c128_16, %c0_17] : memref<1216x256xbf16, #tpu.memory_space<vmem>>, vector<256x256xbf16>
    %22 = arith.truncf %20 : vector<8x256xf32> to vector<8x256xbf16>
    %cst_18 = arith.constant dense<0.000000e+00> : vector<8x256xf32>
    %23 = tpu.matmul %22, %21, %cst_18 {dimension_numbers = #tpu.dot_dimension_numbers<[1], [0], [0], [1], [0, 0, 1, 1], [], []>} : vector<8x256xbf16>, vector<256x256xbf16>, vector<8x256xf32> -> vector<8x256xf32>
    %c3 = arith.constant 3 : index
    %c0_19 = arith.constant 0 : index
    %24 = vector.load %arg7[%c3, %c0_19] : memref<16x512xf32, #tpu.memory_space<vmem>>, vector<1x256xf32>
    %25 = vector.broadcast %24 : vector<1x256xf32> to vector<8x256xf32>
    %26 = arith.addf %23, %25 : vector<8x256xf32>
    %c0_20 = arith.constant 0 : index
    %c0_21 = arith.constant 0 : index
    %27 = vector.load %arg6[%c0_20, %c0_21] : memref<512x512xbf16, #tpu.memory_space<vmem>>, vector<256x512xbf16>
    %28 = arith.truncf %26 : vector<8x256xf32> to vector<8x256xbf16>
    %cst_22 = arith.constant dense<0.000000e+00> : vector<8x512xf32>
    %29 = tpu.matmul %28, %27, %cst_22 {dimension_numbers = #tpu.dot_dimension_numbers<[1], [0], [0], [1], [0, 0, 1, 1], [], []>} : vector<8x256xbf16>, vector<256x512xbf16>, vector<8x512xf32> -> vector<8x512xf32>
    %c4 = arith.constant 4 : index
    %c0_23 = arith.constant 0 : index
    %30 = vector.load %arg7[%c4, %c0_23] : memref<16x512xf32, #tpu.memory_space<vmem>>, vector<1x512xf32>
    %31 = vector.broadcast %30 : vector<1x512xf32> to vector<8x512xf32>
    %32 = arith.addf %29, %31 : vector<8x512xf32>
    %c256 = arith.constant 256 : index
    %c0_24 = arith.constant 0 : index
    %33 = vector.load %arg4[%c256, %c0_24] : memref<1536x128xbf16, #tpu.memory_space<vmem>>, vector<512x128xbf16>
    %34 = arith.truncf %32 : vector<8x512xf32> to vector<8x512xbf16>
    %cst_25 = arith.constant dense<0.000000e+00> : vector<8x128xf32>
    %35 = tpu.matmul %34, %33, %cst_25 {dimension_numbers = #tpu.dot_dimension_numbers<[1], [0], [0], [1], [0, 0, 1, 1], [], []>} : vector<8x512xbf16>, vector<512x128xbf16>, vector<8x128xf32> -> vector<8x128xf32>
    %c5 = arith.constant 5 : index
    %c0_26 = arith.constant 0 : index
    %36 = vector.load %arg7[%c5, %c0_26] : memref<16x512xf32, #tpu.memory_space<vmem>>, vector<1x128xf32>
    %37 = vector.broadcast %36 : vector<1x128xf32> to vector<8x128xf32>
    %38 = arith.addf %35, %37 : vector<8x128xf32>
    %39 = vector.extract_strided_slice %38 {offsets = [0, 0], sizes = [8, 32], strides = [1, 1]} : vector<8x128xf32> to vector<8x32xf32>
    %40 = vector.extract_strided_slice %38 {offsets = [0, 32], sizes = [8, 32], strides = [1, 1]} : vector<8x128xf32> to vector<8x32xf32>
    %cst_27 = arith.constant 5.000000e-01 : f32
    %41 = vector.broadcast %cst_27 : f32 to vector<8x32xf32>
    %42 = arith.mulf %41, %40 : vector<8x32xf32>
    %43 = math.exp %42 : vector<8x32xf32>
    %44 = arith.mulf %2, %43 : vector<8x32xf32>
    %45 = arith.addf %44, %39 : vector<8x32xf32>
    %c768 = arith.constant 768 : index
    %c0_28 = arith.constant 0 : index
    %46 = vector.load %arg4[%c768, %c0_28] : memref<1536x128xbf16, #tpu.memory_space<vmem>>, vector<128x128xbf16>
    %47 = arith.truncf %1 : vector<8x128xf32> to vector<8x128xbf16>
    %cst_29 = arith.constant dense<0.000000e+00> : vector<8x128xf32>
    %48 = tpu.matmul %47, %46, %cst_29 {dimension_numbers = #tpu.dot_dimension_numbers<[1], [0], [0], [1], [0, 0, 1, 1], [], []>} : vector<8x128xbf16>, vector<128x128xbf16>, vector<8x128xf32> -> vector<8x128xf32>
    %c6 = arith.constant 6 : index
    %c0_30 = arith.constant 0 : index
    %49 = vector.load %arg7[%c6, %c0_30] : memref<16x512xf32, #tpu.memory_space<vmem>>, vector<1x128xf32>
    %50 = vector.broadcast %49 : vector<1x128xf32> to vector<8x128xf32>
    %51 = arith.addf %48, %50 : vector<8x128xf32>
    %c896 = arith.constant 896 : index
    %c0_31 = arith.constant 0 : index
    %52 = vector.load %arg4[%c896, %c0_31] : memref<1536x128xbf16, #tpu.memory_space<vmem>>, vector<128x128xbf16>
    %53 = arith.truncf %51 : vector<8x128xf32> to vector<8x128xbf16>
    %cst_32 = arith.constant dense<0.000000e+00> : vector<8x128xf32>
    %54 = tpu.matmul %53, %52, %cst_32 {dimension_numbers = #tpu.dot_dimension_numbers<[1], [0], [0], [1], [0, 0, 1, 1], [], []>} : vector<8x128xbf16>, vector<128x128xbf16>, vector<8x128xf32> -> vector<8x128xf32>
    %c7 = arith.constant 7 : index
    %c0_33 = arith.constant 0 : index
    %55 = vector.load %arg7[%c7, %c0_33] : memref<16x512xf32, #tpu.memory_space<vmem>>, vector<1x128xf32>
    %56 = vector.broadcast %55 : vector<1x128xf32> to vector<8x128xf32>
    %57 = arith.addf %54, %56 : vector<8x128xf32>
    %58 = vector.extract_strided_slice %57 {offsets = [0, 0], sizes = [8, 32], strides = [1, 1]} : vector<8x128xf32> to vector<8x32xf32>
    %59 = tpu.concatenate %45, %58 in 1 : vector<8x32xf32>, vector<8x32xf32> -> vector<8x64xf32>
    %c384 = arith.constant 384 : index
    %c0_34 = arith.constant 0 : index
    %60 = vector.load %arg5[%c384, %c0_34] : memref<1216x256xbf16, #tpu.memory_space<vmem>>, vector<64x256xbf16>
    %61 = arith.truncf %59 : vector<8x64xf32> to vector<8x64xbf16>
    %cst_35 = arith.constant dense<0.000000e+00> : vector<8x256xf32>
    %62 = tpu.matmul %61, %60, %cst_35 {dimension_numbers = #tpu.dot_dimension_numbers<[1], [0], [0], [1], [0, 0, 1, 1], [], []>} : vector<8x64xbf16>, vector<64x256xbf16>, vector<8x256xf32> -> vector<8x256xf32>
    %c8 = arith.constant 8 : index
    %c0_36 = arith.constant 0 : index
    %63 = vector.load %arg7[%c8, %c0_36] : memref<16x512xf32, #tpu.memory_space<vmem>>, vector<1x256xf32>
    %64 = vector.broadcast %63 : vector<1x256xf32> to vector<8x256xf32>
    %65 = arith.addf %62, %64 : vector<8x256xf32>
    %c256_37 = arith.constant 256 : index
    %c0_38 = arith.constant 0 : index
    %66 = vector.load %arg6[%c256_37, %c0_38] : memref<512x512xbf16, #tpu.memory_space<vmem>>, vector<256x512xbf16>
    %67 = arith.truncf %65 : vector<8x256xf32> to vector<8x256xbf16>
    %cst_39 = arith.constant dense<0.000000e+00> : vector<8x512xf32>
    %68 = tpu.matmul %67, %66, %cst_39 {dimension_numbers = #tpu.dot_dimension_numbers<[1], [0], [0], [1], [0, 0, 1, 1], [], []>} : vector<8x256xbf16>, vector<256x512xbf16>, vector<8x512xf32> -> vector<8x512xf32>
    %c9 = arith.constant 9 : index
    %c0_40 = arith.constant 0 : index
    %69 = vector.load %arg7[%c9, %c0_40] : memref<16x512xf32, #tpu.memory_space<vmem>>, vector<1x512xf32>
    %70 = vector.broadcast %69 : vector<1x512xf32> to vector<8x512xf32>
    %71 = arith.addf %68, %70 : vector<8x512xf32>
    %c448 = arith.constant 448 : index
    %c0_41 = arith.constant 0 : index
    %72 = vector.load %arg5[%c448, %c0_41] : memref<1216x256xbf16, #tpu.memory_space<vmem>>, vector<512x256xbf16>
    %73 = arith.truncf %71 : vector<8x512xf32> to vector<8x512xbf16>
    %cst_42 = arith.constant dense<0.000000e+00> : vector<8x256xf32>
    %74 = tpu.matmul %73, %72, %cst_42 {dimension_numbers = #tpu.dot_dimension_numbers<[1], [0], [0], [1], [0, 0, 1, 1], [], []>} : vector<8x512xbf16>, vector<512x256xbf16>, vector<8x256xf32> -> vector<8x256xf32>
    %c10 = arith.constant 10 : index
    %c0_43 = arith.constant 0 : index
    %75 = vector.load %arg7[%c10, %c0_43] : memref<16x512xf32, #tpu.memory_space<vmem>>, vector<1x256xf32>
    %76 = vector.broadcast %75 : vector<1x256xf32> to vector<8x256xf32>
    %77 = arith.addf %74, %76 : vector<8x256xf32>
    %c960 = arith.constant 960 : index
    %c0_44 = arith.constant 0 : index
    %78 = vector.load %arg5[%c960, %c0_44] : memref<1216x256xbf16, #tpu.memory_space<vmem>>, vector<256x256xbf16>
    %79 = arith.truncf %77 : vector<8x256xf32> to vector<8x256xbf16>
    %cst_45 = arith.constant dense<0.000000e+00> : vector<8x256xf32>
    %80 = tpu.matmul %79, %78, %cst_45 {dimension_numbers = #tpu.dot_dimension_numbers<[1], [0], [0], [1], [0, 0, 1, 1], [], []>} : vector<8x256xbf16>, vector<256x256xbf16>, vector<8x256xf32> -> vector<8x256xf32>
    %c11 = arith.constant 11 : index
    %c0_46 = arith.constant 0 : index
    %81 = vector.load %arg7[%c11, %c0_46] : memref<16x512xf32, #tpu.memory_space<vmem>>, vector<1x256xf32>
    %82 = vector.broadcast %81 : vector<1x256xf32> to vector<8x256xf32>
    %83 = arith.addf %80, %82 : vector<8x256xf32>
    %c1024 = arith.constant 1024 : index
    %c0_47 = arith.constant 0 : index
    %84 = vector.load %arg4[%c1024, %c0_47] : memref<1536x128xbf16, #tpu.memory_space<vmem>>, vector<256x128xbf16>
    %85 = arith.truncf %83 : vector<8x256xf32> to vector<8x256xbf16>
    %cst_48 = arith.constant dense<0.000000e+00> : vector<8x128xf32>
    %86 = tpu.matmul %85, %84, %cst_48 {dimension_numbers = #tpu.dot_dimension_numbers<[1], [0], [0], [1], [0, 0, 1, 1], [], []>} : vector<8x256xbf16>, vector<256x128xbf16>, vector<8x128xf32> -> vector<8x128xf32>
    %c12 = arith.constant 12 : index
    %c0_49 = arith.constant 0 : index
    %87 = vector.load %arg7[%c12, %c0_49] : memref<16x512xf32, #tpu.memory_space<vmem>>, vector<1x128xf32>
    %88 = vector.broadcast %87 : vector<1x128xf32> to vector<8x128xf32>
    %89 = arith.addf %86, %88 : vector<8x128xf32>
    %c1280 = arith.constant 1280 : index
    %c0_50 = arith.constant 0 : index
    %90 = vector.load %arg4[%c1280, %c0_50] : memref<1536x128xbf16, #tpu.memory_space<vmem>>, vector<128x128xbf16>
    %91 = arith.truncf %89 : vector<8x128xf32> to vector<8x128xbf16>
    %cst_51 = arith.constant dense<0.000000e+00> : vector<8x128xf32>
    %92 = tpu.matmul %91, %90, %cst_51 {dimension_numbers = #tpu.dot_dimension_numbers<[1], [0], [0], [1], [0, 0, 1, 1], [], []>} : vector<8x128xbf16>, vector<128x128xbf16>, vector<8x128xf32> -> vector<8x128xf32>
    %c13 = arith.constant 13 : index
    %c0_52 = arith.constant 0 : index
    %93 = vector.load %arg7[%c13, %c0_52] : memref<16x512xf32, #tpu.memory_space<vmem>>, vector<1x128xf32>
    %94 = vector.broadcast %93 : vector<1x128xf32> to vector<8x128xf32>
    %95 = arith.addf %92, %94 : vector<8x128xf32>
    %c1408 = arith.constant 1408 : index
    %c0_53 = arith.constant 0 : index
    %96 = vector.load %arg4[%c1408, %c0_53] : memref<1536x128xbf16, #tpu.memory_space<vmem>>, vector<128x128xbf16>
    %97 = arith.truncf %95 : vector<8x128xf32> to vector<8x128xbf16>
    %cst_54 = arith.constant dense<0.000000e+00> : vector<8x128xf32>
    %98 = tpu.matmul %97, %96, %cst_54 {dimension_numbers = #tpu.dot_dimension_numbers<[1], [0], [0], [1], [0, 0, 1, 1], [], []>} : vector<8x128xbf16>, vector<128x128xbf16>, vector<8x128xf32> -> vector<8x128xf32>
    %c14 = arith.constant 14 : index
    %c0_55 = arith.constant 0 : index
    %99 = vector.load %arg7[%c14, %c0_55] : memref<16x512xf32, #tpu.memory_space<vmem>>, vector<1x128xf32>
    %100 = vector.broadcast %99 : vector<1x128xf32> to vector<8x128xf32>
    %101 = arith.addf %98, %100 : vector<8x128xf32>
    %c0_56 = arith.constant 0 : index
    %c0_57 = arith.constant 0 : index
    %102 = vector.load %arg8[%c0_56, %c0_57] : memref<8x128xf32, #tpu.memory_space<vmem>>, vector<8x128xf32>
    tpu.vector_store %arg8[%c0_56, %c0_57], %101 {strides = array<i32>} : memref<8x128xf32, #tpu.memory_space<vmem>>, vector<8x128xf32>,
    %c0_58 = arith.constant 0 : index
    %c0_59 = arith.constant 0 : index
    %103 = vector.load %arg9[%c0_58, %c0_59] : memref<8x128xf32, #tpu.memory_space<vmem>>, vector<8x128xf32>
    tpu.vector_store %arg9[%c0_58, %c0_59], %38 {strides = array<i32>} : memref<8x128xf32, #tpu.memory_space<vmem>>, vector<8x128xf32>,
    return
  }
  func.func @transform_0(%arg0: i32) -> (i32, i32) {
    %c0_i32 = arith.constant 0 : i32
    %c0_i32_0 = arith.constant 0 : i32
    return %arg0, %c0_i32 : i32, i32
  }
  func.func @transform_1(%arg0: i32) -> (i32, i32) {
    %c0_i32 = arith.constant 0 : i32
    %c0_i32_0 = arith.constant 0 : i32
    return %arg0, %c0_i32 : i32, i32
  }
  func.func @transform_2(%arg0: i32) -> (i32, i32) {
    %c0_i32 = arith.constant 0 : i32
    %c0_i32_0 = arith.constant 0 : i32
    return %arg0, %c0_i32 : i32, i32
  }
  func.func @transform_3(%arg0: i32) -> (i32, i32) {
    %c0_i32 = arith.constant 0 : i32
    %c0_i32_0 = arith.constant 0 : i32
    %c0_i32_1 = arith.constant 0 : i32
    return %c0_i32, %c0_i32_0 : i32, i32
  }
  func.func @transform_4(%arg0: i32) -> (i32, i32) {
    %c0_i32 = arith.constant 0 : i32
    %c0_i32_0 = arith.constant 0 : i32
    %c0_i32_1 = arith.constant 0 : i32
    return %c0_i32, %c0_i32_0 : i32, i32
  }
  func.func @transform_5(%arg0: i32) -> (i32, i32) {
    %c0_i32 = arith.constant 0 : i32
    %c0_i32_0 = arith.constant 0 : i32
    %c0_i32_1 = arith.constant 0 : i32
    return %c0_i32, %c0_i32_0 : i32, i32
  }
  func.func @transform_6(%arg0: i32) -> (i32, i32) {
    %c0_i32 = arith.constant 0 : i32
    %c0_i32_0 = arith.constant 0 : i32
    %c0_i32_1 = arith.constant 0 : i32
    return %c0_i32, %c0_i32_0 : i32, i32
  }
  func.func @transform_7(%arg0: i32) -> (i32, i32) {
    %c0_i32 = arith.constant 0 : i32
    %c0_i32_0 = arith.constant 0 : i32
    return %arg0, %c0_i32 : i32, i32
  }
  func.func @transform_8(%arg0: i32) -> (i32, i32) {
    %c0_i32 = arith.constant 0 : i32
    %c0_i32_0 = arith.constant 0 : i32
    return %arg0, %c0_i32 : i32, i32
  }
}

</mosaic_0001>

<bundles_post_ra>
// kernel: mlp_reconstruct_forward.1
= control target key start
LH: loop header
LB: loop body
LE: loop exit
PB: predicated region body
PF: predicated region fallthrough
CT: control target
= control target key end

     0   :  { %14 = vsyncpa [#allocation3], 0  ;;  %s5008_s0 = inlined_call_operand.vmem [shape: f32[8,128], index: 0, kind: input, shape index: {}]   ;;  %s5009_s1 = inlined_call_operand.vmem [shape: f32[8,128], index: 1, kind: input, shape index: {}]   ;;  %s5010_s2 = inlined_call_operand.vmem [shape: f32[8,32], index: 2, kind: input, shape index: {}]   ;;  %s5011_s3 = inlined_call_operand.hbm [shape: bf16[1536,128], index: 3, kind: input, shape index: {}]   ;;  %s5012_s4 = inlined_call_operand.hbm [shape: bf16[1216,256], index: 4, kind: input, shape index: {}]   ;;  %s5013_s5 = inlined_call_operand.hbm [shape: bf16[512,512], index: 5, kind: input, shape index: {}]   ;;  %s5014_s6 = inlined_call_operand.vmem [shape: f32[16,512], index: 6, kind: input, shape index: {}]   ;;  %s5015_s7 = inlined_call_operand.hbm [shape: f32[8,128], index: 7, kind: output, shape index: {0}]   ;;  %s5016_s8 = inlined_call_operand.vmem [shape: f32[8,128], index: 8, kind: output, shape index: {1}]  }
   0x1   :  { %15 = vsyncpa [#allocation6], 0 }
   0x2   :  { %16 = vsyncpa [#allocation4], 0  ;;  %s4735_s27 = smov [#allocation5]   ;;  %s4641_s9 = scalar_lea.hbm %s5012_s4, 19456 }
   0x3   :  { %s40_s28 = sshll.u32 %s4735_s27, 4  ;;  %p4642_p0 = scmp.ne.s32.totalorder %s5012_s4, %s4641_s9  ;;  %s41_s28 = int_to_ptr.vmem [resolvable:$true] %s40_s28 }
   0x4   :  { %p4645_p1 = scmp.lt.u32.totalorder %s4641_s9, %s5012_s4 }
   0x6   :  { %p4647_p2 = pnand %p4645_p1, %p4642_p0 }
   0x8   :  { %4650 = shalt.err (!%p4647_p2)
}
   0x9   :  { %s4651_s14 = scalar_lea.vmem %s41_s28, 19456  ;;  %p4656_p4 = scmp.lt.s32.totalorder %s41_s28, %s41_s28 }
   0xa   :  { %p4652_p3 = scmp.ne.s32.totalorder %s41_s28, %s4651_s14  ;;  %p4657_p5 = scmp.lt.s32.totalorder %s4651_s14, %s4651_s14 }
   0xc   :  { %p4658_p6 = por %p4657_p5, %p4656_p4 }
   0xe   :  { %p4659_p7 = pnand %p4658_p6, %p4652_p3 }
  0x10   :  { %4662 = shalt.err (!%p4659_p7)
}
  0x11   :  { %s4736_s15 = smov 128   ;;  %s4737_s16 = smov 8  }
  0x12   :  { %46 = dma.hbm_to_vmem [thread:$0]  %s5012_s4, 19456, %s41_s28, [#allocation6], %s4736_s15, %s4736_s15, %s4737_s16  }
  0x13   :  { %s4738_s19 = smov [#allocation2]   ;;  %s4663_s23 = scalar_lea.hbm %s5011_s3, 12288 }
  0x14   :  { %s28_s20 = sshll.u32 %s4738_s19, 4  ;;  %p4664_p8 = scmp.ne.s32.totalorder %s5011_s3, %s4663_s23  ;;  %s29_s20 = int_to_ptr.vmem [resolvable:$true] %s28_s20 }
  0x15   :  { %p4667_p9 = scmp.lt.u32.totalorder %s4663_s23, %s5011_s3 }
  0x17   :  { %p4669_p10 = pnand %p4667_p9, %p4664_p8 }
  0x19   :  { %4672 = shalt.err (!%p4669_p10)
}
  0x1a   :  { %s4673_s29 = scalar_lea.vmem %s29_s20, 12288  ;;  %p4678_p12 = scmp.lt.s32.totalorder %s29_s20, %s29_s20 }
  0x1b   :  { %p4674_p11 = scmp.ne.s32.totalorder %s29_s20, %s4673_s29  ;;  %p4679_p13 = scmp.lt.s32.totalorder %s4673_s29, %s4673_s29 }
  0x1d   :  { %p4680_p0 = por %p4679_p13, %p4678_p12 }
  0x1f   :  { %p4681_p1 = pnand %p4680_p0, %p4674_p11 }
  0x21   :  { %4684 = shalt.err (!%p4681_p1)
}
  0x22   :  { %s4739_s4 = smov 64   ;;  %s4740_s28 = smov 4  }
  0x23   :  { %34 = dma.hbm_to_vmem [thread:$0]  %s5011_s3, 12288, %s29_s20, [#allocation3], %s4739_s4, %s4739_s4, %s4740_s28  }
  0x24   :  { %s4741_s10 = smov [#allocation7]   ;;  %s4685_s14 = scalar_lea.hbm %s5013_s5, 16384 }
  0x25   :  { %s52_s11 = sshll.u32 %s4741_s10, 4  ;;  %p4686_p2 = scmp.ne.s32.totalorder %s5013_s5, %s4685_s14  ;;  %s53_s11 = int_to_ptr.vmem [resolvable:$true] %s52_s11 }
  0x26   :  { %p4689_p3 = scmp.lt.u32.totalorder %s4685_s14, %s5013_s5 }
  0x28   :  { %p4691_p4 = pnand %p4689_p3, %p4686_p2 }
  0x2a   :  { %4694 = shalt.err (!%p4691_p4)
}
  0x2b   :  { %s4695_s19 = scalar_lea.vmem %s53_s11, 16384  ;;  %p4700_p6 = scmp.lt.s32.totalorder %s53_s11, %s53_s11 }
  0x2c   :  { %p4696_p5 = scmp.ne.s32.totalorder %s53_s11, %s4695_s19  ;;  %p4701_p7 = scmp.lt.s32.totalorder %s4695_s19, %s4695_s19 }
  0x2e   :  { %p4702_p8 = por %p4701_p7, %p4700_p6 }
  0x30   :  { %p4703_p9 = pnand %p4702_p8, %p4696_p5 }
  0x32   :  { %4706 = shalt.err (!%p4703_p9)
}
  0x33   :  { %s4742_s3 = smov 256   ;;  %s4743_s20 = smov 16  }
  0x34   :  { %58 = dma.hbm_to_vmem [thread:$0]  %s5013_s5, 16384, %s53_s11, [#allocation6], %s4742_s3, %s4742_s3, %s4743_s20  }
  0x35   :  { %4729 = dma.done.wait [#allocation3], 12288  }
  0x36   :  { %4730 = vsyncadd [#allocation3], 4294955008 }
  0x37   :  { %4731 = dma.done.wait [#allocation6], 35840  }
  0x38   :  { %4732 = vsyncadd [#allocation6], 4294931456  ;;  %v4744_v0 = vmov 0.0   ;;  %vm4745_vm0 = vmmov 0   ;;  %v4123_v1 = vld [vmem:[#allocation2] sm:$0xff]   ;;  %v4124_v2 = vld [vmem:[#allocation2 + $0x8] sm:$0xff]  }
  0x39   :  { %3982 = vmatprep.subr.bf16.mxu0 %v4744_v0  ;;  %3998 = vmatprep.mubr.msk.bf16.mxu0 %vm4745_vm0, %v4744_v0  ;;  %v4125_v3 = vld [vmem:[#allocation2 + $0x10] sm:$0xff]   ;;  %v4131_v4 = vld [vmem:[#allocation2 + $0x40] sm:$0xff]   ;;  %v4126_v5 = vld [vmem:[#allocation2 + $0x18] sm:$0xff]   ;;  %v4746_v42 = vmov 0   ;;  %s4747_s17 = smov 96   ;;  %s4748_s19 = smov 32  }
  0x3a   :  { %4002 = vmatprep.subr.bf16.mxu1 %v4744_v0  ;;  %4018 = vmatprep.mubr.msk.bf16.mxu1 %vm4745_vm0, %v4744_v0  ;;  %v4132_v6 = vld [vmem:[#allocation2 + $0x48] sm:$0xff]   ;;  %v4127_v7 = vld [vmem:[#allocation2 + $0x20] sm:$0xff]   ;;  %v4133_v8 = vld [vmem:[#allocation2 + $0x50] sm:$0xff]   ;;  %vm1742_vm1 = vcmask 261120   ;;  %vm1806_vm2 = vcmask 523264   ;;  %s4749_s9 = smov [#allocation8]  }
  0x3b   :  { %3983 = vmatpush3.bf16.msra.mxu0 %v4123_v1  ;;  %4003 = vmatpush3.bf16.msra.mxu1 %v4131_v4  ;;  %v4128_v9 = vld [vmem:[#allocation2 + $0x28] sm:$0xff]   ;;  %v4134_v10 = vld [vmem:[#allocation2 + $0x58] sm:$0xff]   ;;  %v4129_v11 = vld [vmem:[#allocation2 + $0x30] sm:$0xff]   ;;  %s3464_s10 = sshll.u32 %s4749_s9, 4  ;;  %s3465_s10 = int_to_ptr.vmem [resolvable:$true] %s3464_s10 }
  0x3c   :  { %3984 = vmatprep.subr.bf16.mxu0 %v4744_v0  ;;  %4004 = vmatprep.subr.bf16.mxu1 %v4744_v0  ;;  %v4135_v12 = vld [vmem:[#allocation2 + $0x60] sm:$0xff]   ;;  %v4130_v13 = vld [vmem:[#allocation2 + $0x38] sm:$0xff]   ;;  %v4136_v15 = vld [vmem:[#allocation2 + $0x68] sm:$0xff]   ;;  %s4707_s11 = scalar_lea.vmem %s3465_s10, 128  ;;  %p4712_p11 = scmp.lt.s32.totalorder %s3465_s10, %s3465_s10 }
  0x3d   :  { %v71_v14 = vld [vmem:[%s5008_s0] sm:$0xff]  ;;  %v4137_v17 = vld [vmem:[#allocation2 + $0x70] sm:$0xff]   ;;  %v4138_v18 = vld [vmem:[#allocation2 + $0x78] sm:$0xff]   ;;  %p4708_p10 = scmp.ne.s32.totalorder %s3465_s10, %s4707_s11  ;;  %p4713_p12 = scmp.lt.s32.totalorder %s4707_s11, %s4707_s11 }
  0x3e   :  { %v90_v16 = vpack.c.bf16 %v71_v14, %v71_v14  ;;  %v4139_v19 = vld [vmem:[#allocation5] ss:$8 sps:$4 sm:$0xff]   ;;  %v4141_v20 = vld [vmem:[#allocation5 + $0x4] ss:$8 sps:$4 sm:$0xff]   ;;  %v4144_v21 = vld [vmem:[#allocation5 + $0x14] ss:$8 sps:$4 sm:$0xff]  }
  0x3f   :  { %3985 = vmatpush3.bf16.msra.mxu0 %v4124_v2  ;;  %4005 = vmatpush3.bf16.msra.mxu1 %v4132_v6  ;;  %v4142_v22 = vld [vmem:[#allocation5 + $0x10] ss:$8 sps:$4 sm:$0xff]   ;;  %v4147_v23 = vld [vmem:[#allocation5 + $0x24] ss:$8 sps:$4 sm:$0xff]   ;;  %v4145_v24 = vld [vmem:[#allocation5 + $0x20] ss:$8 sps:$4 sm:$0xff]   ;;  %p4714_p13 = por %p4713_p12, %p4712_p11 }
  0x40   :  { %3986 = vmatprep.subr.bf16.mxu0 %v4744_v0  ;;  %4006 = vmatprep.subr.bf16.mxu1 %v4744_v0  ;;  %v4150_v25 = vld [vmem:[#allocation5 + $0x34] ss:$8 sps:$4 sm:$0xff]   ;;  %v4148_v26 = vld [vmem:[#allocation5 + $0x30] ss:$8 sps:$4 sm:$0xff]   ;;  %v4153_v27 = vld [vmem:[#allocation5 + $0x44] ss:$8 sps:$4 sm:$0xff]  }
  0x41   :  { %v4151_v28 = vld [vmem:[#allocation5 + $0x40] ss:$8 sps:$4 sm:$0xff]   ;;  %v4156_v29 = vld [vmem:[#allocation5 + $0x54] ss:$8 sps:$4 sm:$0xff]   ;;  %v4154_v30 = vld [vmem:[#allocation5 + $0x50] ss:$8 sps:$4 sm:$0xff]   ;;  %p4715_p0 = pnand %p4714_p13, %p4708_p10 }
  0x42   :  { %v4159_v31 = vld [vmem:[#allocation5 + $0x64] ss:$8 sps:$4 sm:$0xff]   ;;  %v4157_v32 = vld [vmem:[#allocation5 + $0x60] ss:$8 sps:$4 sm:$0xff]   ;;  %v4162_v40 = vld [vmem:[#allocation5 + $0x74] ss:$8 sps:$4 sm:$0xff]  }
  0x43   :  { %3987 = vmatpush3.bf16.msra.mxu0 %v4125_v3  ;;  %4007 = vmatpush3.bf16.msra.mxu1 %v4133_v8  ;;  %v91_v33 = vld [vmem:[%s5014_s6] ss:$0 sm:$0xff]  ;;  %v4160_v41 = vld [vmem:[#allocation5 + $0x70] ss:$8 sps:$4 sm:$0xff]   ;;  %v4165_v44 = vld [vmem:[#allocation5 + $0x84] ss:$8 sps:$4 sm:$0xff]  }
  0x44   :  { %3988 = vmatprep.subr.bf16.mxu0 %v4744_v0  ;;  %4008 = vmatprep.subr.bf16.mxu1 %v4744_v0  ;;  %v4163_v43 = vld [vmem:[#allocation5 + $0x80] ss:$8 sps:$4 sm:$0xff]   ;;  %v4168_v45 = vld [vmem:[#allocation5 + $0x94] ss:$8 sps:$4 sm:$0xff]   ;;  %v4166_v46 = vld [vmem:[#allocation5 + $0x90] ss:$8 sps:$4 sm:$0xff]  }
  0x45   :  { %v4171_v47 = vld [vmem:[#allocation5 + $0xa4] ss:$8 sps:$4 sm:$0xff]   ;;  %v4169_v48 = vld [vmem:[#allocation5 + $0xa0] ss:$8 sps:$4 sm:$0xff]   ;;  %v4174_v49 = vld [vmem:[#allocation5 + $0xb4] ss:$8 sps:$4 sm:$0xff]  }
  0x46   :  { %v4172_v50 = vld [vmem:[#allocation5 + $0xb0] ss:$8 sps:$4 sm:$0xff]   ;;  %v4177_v51 = vld [vmem:[#allocation5 + $0xc4] ss:$8 sps:$4 sm:$0xff]   ;;  %v4175_v52 = vld [vmem:[#allocation5 + $0xc0] ss:$8 sps:$4 sm:$0xff]  }
  0x47   :  { %3989 = vmatpush3.bf16.msra.mxu0 %v4126_v5  ;;  %4009 = vmatpush3.bf16.msra.mxu1 %v4134_v10  ;;  %v4180_v53 = vld [vmem:[#allocation5 + $0xd4] ss:$8 sps:$4 sm:$0xff]   ;;  %v4178_v54 = vld [vmem:[#allocation5 + $0xd0] ss:$8 sps:$4 sm:$0xff]   ;;  %v4183_v55 = vld [vmem:[#allocation5 + $0xe4] ss:$8 sps:$4 sm:$0xff]  }
  0x48   :  { %3990 = vmatprep.subr.bf16.mxu0 %v4744_v0  ;;  %4010 = vmatprep.subr.bf16.mxu1 %v4744_v0  ;;  %v4181_v56 = vld [vmem:[#allocation5 + $0xe0] ss:$8 sps:$4 sm:$0xff]   ;;  %v4186_v57 = vld [vmem:[#allocation5 + $0xf4] ss:$8 sps:$4 sm:$0xff]   ;;  %v4184_v58 = vld [vmem:[#allocation5 + $0xf0] ss:$8 sps:$4 sm:$0xff]  }
  0x49   :  { %v4189_v59 = vld [vmem:[#allocation5 + $0x104] ss:$8 sps:$4 sm:$0xff]   ;;  %v4187_v60 = vld [vmem:[#allocation5 + $0x100] ss:$8 sps:$4 sm:$0xff]   ;;  %v4192_v61 = vld [vmem:[#allocation5 + $0x114] ss:$8 sps:$4 sm:$0xff]  }
  0x4a   :  { %v4190_v62 = vld [vmem:[#allocation5 + $0x110] ss:$8 sps:$4 sm:$0xff]   ;;  %v4195_v63 = vld [vmem:[#allocation5 + $0x124] ss:$8 sps:$4 sm:$0xff]   ;;  %v4193_v1 = vld [vmem:[#allocation5 + $0x120] ss:$8 sps:$4 sm:$0xff]  }
  0x4b   :  { %3991 = vmatpush3.bf16.msra.mxu0 %v4127_v7  ;;  %4011 = vmatpush3.bf16.msra.mxu1 %v4135_v12  ;;  %v4198_v2 = vld [vmem:[#allocation5 + $0x134] ss:$8 sps:$4 sm:$0xff]   ;;  %v4196_v3 = vld [vmem:[#allocation5 + $0x130] ss:$8 sps:$4 sm:$0xff]   ;;  %v4201_v4 = vld [vmem:[#allocation5 + $0x144] ss:$8 sps:$4 sm:$0xff]  }
  0x4c   :  { %3992 = vmatprep.subr.bf16.mxu0 %v4744_v0  ;;  %4012 = vmatprep.subr.bf16.mxu1 %v4744_v0  ;;  %v4199_v5 = vld [vmem:[#allocation5 + $0x140] ss:$8 sps:$4 sm:$0xff]   ;;  %v4204_v6 = vld [vmem:[#allocation5 + $0x154] ss:$8 sps:$4 sm:$0xff]   ;;  %v4202_v7 = vld [vmem:[#allocation5 + $0x150] ss:$8 sps:$4 sm:$0xff]  }
  0x4d   :  { %v4207_v8 = vld [vmem:[#allocation5 + $0x164] ss:$8 sps:$4 sm:$0xff]   ;;  %v197_v10 = vld [vmem:[%s5014_s6 + $0x1] ss:$0 sm:$0xff] }
  0x4f   :  { %3993 = vmatpush3.bf16.msra.mxu0 %v4128_v9  ;;  %4013 = vmatpush3.bf16.msra.mxu1 %v4136_v15  ;;  %v4205_v9 = vld [vmem:[#allocation5 + $0x160] ss:$8 sps:$4 sm:$0xff]  }
  0x50   :  { %3994 = vmatprep.subr.bf16.mxu0 %v4744_v0  ;;  %4014 = vmatprep.subr.bf16.mxu1 %v4744_v0 }
  0x53   :  { %3995 = vmatpush3.bf16.msra.mxu0 %v4129_v11  ;;  %4015 = vmatpush3.bf16.msra.mxu1 %v4137_v17  ;;  %v4210_v17 = vld [vmem:[#allocation5 + $0x174] ss:$8 sps:$4 sm:$0xff]  }
  0x54   :  { %3996 = vmatprep.subr.bf16.mxu0 %v4744_v0  ;;  %4016 = vmatprep.subr.bf16.mxu1 %v4744_v0 }
  0x57   :  { %3997 = vmatpush3.bf16.msra.mxu0 %v4130_v13  ;;  %4017 = vmatpush3.bf16.msra.mxu1 %v4138_v18  ;;  %v4208_v18 = vld [vmem:[#allocation5 + $0x170] ss:$8 sps:$4 sm:$0xff]  }
  0x58   :  { %396 = vmatprep.subr.bf16.mxu0 %v4141_v20  ;;  %644 = vmatprep.subr.bf16.mxu1 %v4165_v44  ;;  %v4213_v20 = vld [vmem:[#allocation7 + $0x4] ss:$16 sps:$4 sm:$0xff]   ;;  %v4277_v44 = vld [vmem:[#allocation7 + $0x160] ss:$16 sps:$4 sm:$0xff]  }
  0x5a   :  { %3999 = vmatmul.mubr.bf16.vlgmr.msra.gmra.mrb[0].mxu0 %v90_v16 }
  0x5b   :  { %397 = vmatpush1.bf16.msra.mxu0 %v4139_v19  ;;  %428 = vmatprep.mubr.bf16.mxu0 %v4746_v42  ;;  %v4211_v19 = vld [vmem:[#allocation7] ss:$16 sps:$4 sm:$0xff]  }
  0x5c   :  { %398 = vmatprep.subr.bf16.mxu0 %v4144_v21  ;;  %v4216_v21 = vld [vmem:[#allocation7 + $0xc] ss:$16 sps:$4 sm:$0xff]  }
  0x5f   :  { %399 = vmatpush1.bf16.msra.mxu0 %v4142_v22  ;;  %v4219_v22 = vld [vmem:[#allocation7 + $0x24] ss:$16 sps:$4 sm:$0xff]  }
  0x60   :  { %400 = vmatprep.subr.bf16.mxu0 %v4147_v23  ;;  %v4217_v23 = vld [vmem:[#allocation7 + $0x20] ss:$16 sps:$4 sm:$0xff]  }
  0x63   :  { %401 = vmatpush1.bf16.msra.mxu0 %v4145_v24  ;;  %v4225_v24 = vld [vmem:[#allocation7 + $0x44] ss:$16 sps:$4 sm:$0xff]  }
  0x64   :  { %402 = vmatprep.subr.bf16.mxu0 %v4150_v25  ;;  %v4223_v25 = vld [vmem:[#allocation7 + $0x40] ss:$16 sps:$4 sm:$0xff]  }
  0x67   :  { %403 = vmatpush1.bf16.msra.mxu0 %v4148_v26  ;;  %v4231_v26 = vld [vmem:[#allocation7 + $0x64] ss:$16 sps:$4 sm:$0xff]  }
  0x68   :  { %404 = vmatprep.subr.bf16.mxu0 %v4153_v27  ;;  %v4229_v27 = vld [vmem:[#allocation7 + $0x60] ss:$16 sps:$4 sm:$0xff]  }
  0x6b   :  { %405 = vmatpush1.bf16.msra.mxu0 %v4151_v28  ;;  %v4237_v28 = vld [vmem:[#allocation7 + $0x84] ss:$16 sps:$4 sm:$0xff]  }
  0x6c   :  { %406 = vmatprep.subr.bf16.mxu0 %v4156_v29  ;;  %v4235_v29 = vld [vmem:[#allocation7 + $0x80] ss:$16 sps:$4 sm:$0xff]  }
  0x6f   :  { %407 = vmatpush1.bf16.msra.mxu0 %v4154_v30  ;;  %v4243_v30 = vld [vmem:[#allocation7 + $0xa4] ss:$16 sps:$4 sm:$0xff]  }
  0x70   :  { %408 = vmatprep.subr.bf16.mxu0 %v4159_v31  ;;  %v4241_v31 = vld [vmem:[#allocation7 + $0xa0] ss:$16 sps:$4 sm:$0xff]  }
  0x73   :  { %409 = vmatpush1.bf16.msra.mxu0 %v4157_v32  ;;  %v4249_v32 = vld [vmem:[#allocation7 + $0xc4] ss:$16 sps:$4 sm:$0xff]  }
  0x74   :  { %410 = vmatprep.subr.bf16.mxu0 %v4162_v40  ;;  %v4273_v40 = vld [vmem:[#allocation7 + $0x144] ss:$16 sps:$4 sm:$0xff]  }
  0x77   :  { %411 = vmatpush1.bf16.msra.mxu0 %v4160_v41  ;;  %v4271_v41 = vld [vmem:[#allocation7 + $0x140] ss:$16 sps:$4 sm:$0xff]  }
  0x78   :  { %1094 = vmatprep.subr.bf16.mxu0 %v4213_v20  ;;  %v4270_v20 = vld [vmem:[#allocation7 + $0x12c] ss:$16 sps:$4 sm:$0xff]  }
 0x12d   :  { %v174_v34 = vpop.f32.mrb[0].mxu0 }
 0x12e   :  { %v175_v35 = vadd.f32 %v174_v34, %v91_v33  ;;  %v4000_v36 = vpop.f32.mrb[1].mxu0  ;;  %v4247_v33 = vld [vmem:[#allocation7 + $0xc0] ss:$16 sps:$4 sm:$0xff]   ;;  %v4255_v34 = vld [vmem:[#allocation7 + $0xe4] ss:$16 sps:$4 sm:$0xff]  }
 0x12f   :  { %v177_v37 = vpop.f32.mrb[2].mxu0  ;;  %v4261_v36 = vld [vmem:[#allocation7 + $0x104] ss:$16 sps:$4 sm:$0xff]  }
 0x130   :  { %v196_v38 = vpack.c.bf16 %v175_v35, %v175_v35  ;;  %v4001_v39 = vpop.f32.mrb[3].mxu0  ;;  %v4253_v35 = vld [vmem:[#allocation7 + $0xe0] ss:$16 sps:$4 sm:$0xff]  }
 0x131   :  { %v4259_v37 = vld [vmem:[#allocation7 + $0x100] ss:$16 sps:$4 sm:$0xff]  }
 0x132   :  { %4019 = vmatmul.mubr.bf16.vlgmr.msra.gmra.mrb[0].mxu1 %v196_v38  ;;  %v4267_v38 = vld [vmem:[#allocation7 + $0x124] ss:$16 sps:$4 sm:$0xff]   ;;  %v4265_v39 = vld [vmem:[#allocation7 + $0x120] ss:$16 sps:$4 sm:$0xff]  }
 0x133   :  { %645 = vmatpush1.bf16.msra.mxu1 %v4163_v43  ;;  %v4279_v43 = vld [vmem:[#allocation7 + $0x164] ss:$16 sps:$4 sm:$0xff]  }
 0x134   :  { %646 = vmatprep.subr.bf16.mxu1 %v4168_v45  ;;  %v4285_v45 = vld [vmem:[#allocation7 + $0x184] ss:$16 sps:$4 sm:$0xff]  }
 0x137   :  { %647 = vmatpush1.bf16.msra.mxu1 %v4166_v46  ;;  %v4283_v46 = vld [vmem:[#allocation7 + $0x180] ss:$16 sps:$4 sm:$0xff]  }
 0x138   :  { %648 = vmatprep.subr.bf16.mxu1 %v4171_v47  ;;  %v4291_v47 = vld [vmem:[#allocation7 + $0x1a4] ss:$16 sps:$4 sm:$0xff]  }
 0x13b   :  { %649 = vmatpush1.bf16.msra.mxu1 %v4169_v48  ;;  %v4289_v48 = vld [vmem:[#allocation7 + $0x1a0] ss:$16 sps:$4 sm:$0xff]  }
 0x13c   :  { %650 = vmatprep.subr.bf16.mxu1 %v4174_v49  ;;  %v4297_v49 = vld [vmem:[#allocation7 + $0x1c4] ss:$16 sps:$4 sm:$0xff]  }
 0x13f   :  { %651 = vmatpush1.bf16.msra.mxu1 %v4172_v50  ;;  %v4295_v50 = vld [vmem:[#allocation7 + $0x1c0] ss:$16 sps:$4 sm:$0xff]  }
 0x140   :  { %652 = vmatprep.subr.bf16.mxu1 %v4177_v51  ;;  %v306_v51 = vlaneseq }
 0x143   :  { %653 = vmatpush1.bf16.msra.mxu1 %v4175_v52  ;;  %v4861_v52 = vshrl.u32 %v306_v51, 7  ;;  %v4317_v51 = vld [vmem:[#allocation2 + $0xc8] sm:$0xff]  }
 0x144   :  { %654 = vmatprep.subr.bf16.mxu1 %v4180_v53 }
 0x145   :  { %v4864_v53 = vsub.s32 0, %v4861_v52 }
 0x147   :  { %655 = vmatpush1.bf16.msra.mxu1 %v4178_v54  ;;  %v3494_v54 = vld [vmem:[%s5014_s6 + $0x2] ss:$8 sm:$0x3] }
 0x148   :  { %656 = vmatprep.subr.bf16.mxu1 %v4183_v55  ;;  %v4870_v55 = vsub.s32 1, %v4861_v52 }
 0x14b   :  { %657 = vmatpush1.bf16.msra.mxu1 %v4181_v56  ;;  %v309_v56 = vrot.slane %v3494_v54, %v4864_v53 }
 0x14c   :  { %658 = vmatprep.subr.bf16.mxu1 %v4186_v57  ;;  %v313_v57 = vrot.slane %v3494_v54, %v4870_v55  ;;  %v4308_v54 = vld [vmem:[#allocation2 + $0x188] sm:$0xff]  }
 0x14f   :  { %659 = vmatpush1.bf16.msra.mxu1 %v4184_v58 }
 0x150   :  { %660 = vmatprep.subr.bf16.mxu1 %v4189_v59 }
 0x153   :  { %661 = vmatpush1.bf16.msra.mxu1 %v4187_v60 }
 0x154   :  { %662 = vmatprep.subr.bf16.mxu1 %v4192_v61 }
 0x157   :  { %663 = vmatpush1.bf16.msra.mxu1 %v4190_v62 }
 0x158   :  { %664 = vmatprep.subr.bf16.mxu1 %v4195_v63 }
 0x15b   :  { %665 = vmatpush1.bf16.msra.mxu1 %v4193_v1 }
 0x15c   :  { %666 = vmatprep.subr.bf16.mxu1 %v4198_v2  ;;  %v4214_v2 = vld [vmem:[#allocation7 + $0x8] ss:$16 sps:$4 sm:$0xff]  }
 0x15f   :  { %667 = vmatpush1.bf16.msra.mxu1 %v4196_v3 }
 0x160   :  { %668 = vmatprep.subr.bf16.mxu1 %v4201_v4  ;;  %v4222_v4 = vld [vmem:[#allocation7 + $0x2c] ss:$16 sps:$4 sm:$0xff]  }
 0x163   :  { %669 = vmatpush1.bf16.msra.mxu1 %v4199_v5  ;;  %v4220_v5 = vld [vmem:[#allocation7 + $0x28] ss:$16 sps:$4 sm:$0xff]  }
 0x164   :  { %670 = vmatprep.subr.bf16.mxu1 %v4204_v6  ;;  %v4228_v6 = vld [vmem:[#allocation7 + $0x4c] ss:$16 sps:$4 sm:$0xff]  }
 0x167   :  { %671 = vmatpush1.bf16.msra.mxu1 %v4202_v7  ;;  %v4226_v7 = vld [vmem:[#allocation7 + $0x48] ss:$16 sps:$4 sm:$0xff]  }
 0x168   :  { %672 = vmatprep.subr.bf16.mxu1 %v4207_v8  ;;  %v4234_v8 = vld [vmem:[#allocation7 + $0x6c] ss:$16 sps:$4 sm:$0xff]  }
 0x16b   :  { %673 = vmatpush1.bf16.msra.mxu1 %v4205_v9  ;;  %v4232_v9 = vld [vmem:[#allocation7 + $0x68] ss:$16 sps:$4 sm:$0xff]  }
 0x16c   :  { %674 = vmatprep.subr.bf16.mxu1 %v4210_v17  ;;  %v4256_v17 = vld [vmem:[#allocation7 + $0xe8] ss:$16 sps:$4 sm:$0xff]  }
 0x16f   :  { %675 = vmatpush1.bf16.msra.mxu1 %v4208_v18  ;;  %v4264_v18 = vld [vmem:[#allocation7 + $0x10c] ss:$16 sps:$4 sm:$0xff]  }
 0x170   :  { %1135 = vmatprep.subr.bf16.mxu1 %v4216_v21  ;;  %v4268_v21 = vld [vmem:[#allocation7 + $0x128] ss:$16 sps:$4 sm:$0xff]  }
 0x205   :  { %v280_v11 = vpop.f32.mrb[0].mxu1 }
 0x206   :  { %v281_v12 = vadd.f32 %v280_v11, %v197_v10  ;;  %v4020_v13 = vpop.f32.mrb[1].mxu1  ;;  %v4240_v10 = vld [vmem:[#allocation7 + $0x8c] ss:$16 sps:$4 sm:$0xff]   ;;  %v4238_v11 = vld [vmem:[#allocation7 + $0x88] ss:$16 sps:$4 sm:$0xff]  }
 0x207   :  { %v283_v14 = vpop.f32.mrb[2].mxu1  ;;  %v4244_v13 = vld [vmem:[#allocation7 + $0xa8] ss:$16 sps:$4 sm:$0xff]  }
 0x208   :  { %v302_v15 = vpack.c.bf16 %v281_v12, %v281_v12  ;;  %v4021_v16 = vpop.f32.mrb[3].mxu1  ;;  %v4246_v12 = vld [vmem:[#allocation7 + $0xac] ss:$16 sps:$4 sm:$0xff]  }
 0x209   :  { %v4252_v14 = vld [vmem:[#allocation7 + $0xcc] ss:$16 sps:$4 sm:$0xff]  }
 0x20a   :  { %429 = vmatmul.mubr.bf16.vlgmr.msra.gmra.mrb[4].mxu0 %v302_v15  ;;  %v4250_v15 = vld [vmem:[#allocation7 + $0xc8] ss:$16 sps:$4 sm:$0xff]   ;;  %v4258_v16 = vld [vmem:[#allocation7 + $0xec] ss:$16 sps:$4 sm:$0xff]  }
 0x20b   :  { %1095 = vmatpush1.bf16.msra.mxu0 %v4211_v19  ;;  %v4262_v19 = vld [vmem:[#allocation7 + $0x108] ss:$16 sps:$4 sm:$0xff]  }
 0x20c   :  { %1096 = vmatprep.subr.bf16.mxu0 %v4219_v22  ;;  %v4276_v22 = vld [vmem:[#allocation7 + $0x14c] ss:$16 sps:$4 sm:$0xff]  }
 0x20f   :  { %1097 = vmatpush1.bf16.msra.mxu0 %v4217_v23  ;;  %v4274_v23 = vld [vmem:[#allocation7 + $0x148] ss:$16 sps:$4 sm:$0xff]  }
 0x210   :  { %1098 = vmatprep.subr.bf16.mxu0 %v4225_v24  ;;  %v4282_v24 = vld [vmem:[#allocation7 + $0x16c] ss:$16 sps:$4 sm:$0xff]  }
 0x213   :  { %1099 = vmatpush1.bf16.msra.mxu0 %v4223_v25  ;;  %v4280_v25 = vld [vmem:[#allocation7 + $0x168] ss:$16 sps:$4 sm:$0xff]  }
 0x214   :  { %1100 = vmatprep.subr.bf16.mxu0 %v4231_v26  ;;  %v4288_v26 = vld [vmem:[#allocation7 + $0x18c] ss:$16 sps:$4 sm:$0xff]  }
 0x217   :  { %1101 = vmatpush1.bf16.msra.mxu0 %v4229_v27  ;;  %v4286_v27 = vld [vmem:[#allocation7 + $0x188] ss:$16 sps:$4 sm:$0xff]  }
 0x218   :  { %1102 = vmatprep.subr.bf16.mxu0 %v4237_v28  ;;  %v4294_v28 = vld [vmem:[#allocation7 + $0x1ac] ss:$16 sps:$4 sm:$0xff]  }
 0x21b   :  { %1103 = vmatpush1.bf16.msra.mxu0 %v4235_v29  ;;  %v4292_v29 = vld [vmem:[#allocation7 + $0x1a8] ss:$16 sps:$4 sm:$0xff]  }
 0x21c   :  { %1104 = vmatprep.subr.bf16.mxu0 %v4243_v30  ;;  %v4300_v30 = vld [vmem:[#allocation7 + $0x1cc] ss:$16 sps:$4 sm:$0xff]  }
 0x21f   :  { %1105 = vmatpush1.bf16.msra.mxu0 %v4241_v31  ;;  %v4298_v31 = vld [vmem:[#allocation7 + $0x1c8] ss:$16 sps:$4 sm:$0xff]  }
 0x220   :  { %1106 = vmatprep.subr.bf16.mxu0 %v4249_v32  ;;  %v4303_v32 = vld [vmem:[#allocation7 + $0x1e4] ss:$16 sps:$4 sm:$0xff]  }
 0x223   :  { %1107 = vmatpush1.bf16.msra.mxu0 %v4247_v33  ;;  %v4306_v33 = vld [vmem:[#allocation7 + $0x1ec] ss:$16 sps:$4 sm:$0xff]  }
 0x224   :  { %1108 = vmatprep.subr.bf16.mxu0 %v4255_v34  ;;  %v4301_v34 = vld [vmem:[#allocation7 + $0x1e0] ss:$16 sps:$4 sm:$0xff]  }
 0x227   :  { %1109 = vmatpush1.bf16.msra.mxu0 %v4253_v35  ;;  %v4304_v35 = vld [vmem:[#allocation7 + $0x1e8] ss:$16 sps:$4 sm:$0xff]  }
 0x228   :  { %1110 = vmatprep.subr.bf16.mxu0 %v4261_v36  ;;  %v4315_v36 = vld [vmem:[#allocation2 + $0xc0] sm:$0xff]  }
 0x22b   :  { %1111 = vmatpush1.bf16.msra.mxu0 %v4259_v37  ;;  %v3511_v37 = vld [vmem:[%s5014_s6 + $0x3] ss:$8 sm:$0x3] }
 0x22c   :  { %1112 = vmatprep.subr.bf16.mxu0 %v4267_v38  ;;  %v477_v38 = vrot.slane %v3511_v37, %v4864_v53 }
 0x22f   :  { %1113 = vmatpush1.bf16.msra.mxu0 %v4265_v39  ;;  %v481_v39 = vrot.slane %v3511_v37, %v4870_v55  ;;  %v4336_v37 = vld [vmem:[#allocation2 + $0x110] sm:$0xff]  }
 0x230   :  { %1114 = vmatprep.subr.bf16.mxu0 %v4273_v40 }
 0x233   :  { %1115 = vmatpush1.bf16.msra.mxu0 %v4271_v41 }
 0x234   :  { %1116 = vmatprep.subr.bf16.mxu0 %v4279_v43 }
 0x237   :  { %1117 = vmatpush1.bf16.msra.mxu0 %v4277_v44 }
 0x238   :  { %1118 = vmatprep.subr.bf16.mxu0 %v4285_v45 }
 0x23b   :  { %1119 = vmatpush1.bf16.msra.mxu0 %v4283_v46 }
 0x23c   :  { %1120 = vmatprep.subr.bf16.mxu0 %v4291_v47 }
 0x23f   :  { %1121 = vmatpush1.bf16.msra.mxu0 %v4289_v48  ;;  %v4307_v48 = vld [vmem:[#allocation2 + $0x180] sm:$0xff]  }
 0x240   :  { %1122 = vmatprep.subr.bf16.mxu0 %v4297_v49 }
 0x243   :  { %1123 = vmatpush1.bf16.msra.mxu0 %v4295_v50  ;;  %v4316_v50 = vld [vmem:[#allocation2 + $0x80] sm:$0xff]  }
 0x244   :  { %1124 = vmatprep.subr.bf16.mxu0 %v4303_v32 }
 0x247   :  { %1125 = vmatpush1.bf16.msra.mxu0 %v4301_v34 }
 0x248   :  { %3880 = vmatprep.subr.bf16.mxu0 %v4315_v36  ;;  %v4335_v36 = vld [vmem:[#allocation2 + $0x150] sm:$0xff]  }
 0x2dd   :  { %v430_v58 = vpop.f32.mrb[4].mxu0 }
 0x2de   :  { %v431_v59 = vadd.f32 %v430_v58, %v309_v56  ;;  %v432_v60 = vpop.f32.mrb[5].mxu0  ;;  %v4318_v56 = vld [vmem:[#allocation2 + $0x88] sm:$0xff]   ;;  %v4309_v58 = vld [vmem:[#allocation2 + $0x190] sm:$0xff]  }
 0x2df   :  { %v433_v61 = vadd.f32 %v432_v60, %v313_v57  ;;  %v434_v62 = vpop.f32.mrb[6].mxu0  ;;  %v4319_v57 = vld [vmem:[#allocation2 + $0xd0] sm:$0xff]   ;;  %v4321_v60 = vld [vmem:[#allocation2 + $0xd8] sm:$0xff]  }
 0x2e0   :  { %v435_v63 = vpop.f32.mrb[7].mxu0  ;;  %v469_v3 = vpack.c.bf16 %v431_v59, %v431_v59  ;;  %v4320_v59 = vld [vmem:[#allocation2 + $0x90] sm:$0xff]   ;;  %v4322_v62 = vld [vmem:[#allocation2 + $0x98] sm:$0xff]  }
 0x2e1   :  { %v470_v1 = vpack.c.bf16 %v433_v61, %v433_v61  ;;  %v4310_v61 = vld [vmem:[#allocation2 + $0x198] sm:$0xff]   ;;  %v4323_v63 = vld [vmem:[#allocation2 + $0xe0] sm:$0xff]  }
 0x2e3   :  { %676 = vmatprep.mubr.bf16.mxu1 %v470_v1  ;;  %v4311_v1 = vld [vmem:[#allocation2 + $0x1a0] sm:$0xff]  }
 0x2e4   :  { %677 = vmatmul.mubr.bf16.vlgmr.msra.gmra.mrb[4].mxu1 %v469_v3  ;;  %v4325_v3 = vld [vmem:[#allocation2 + $0xe8] sm:$0xff]  }
 0x2e5   :  { %1136 = vmatpush1.bf16.msra.mxu1 %v4214_v2  ;;  %v4324_v2 = vld [vmem:[#allocation2 + $0xa0] sm:$0xff]  }
 0x2e6   :  { %1137 = vmatprep.subr.bf16.mxu1 %v4222_v4  ;;  %v4312_v4 = vld [vmem:[#allocation2 + $0x1a8] sm:$0xff]  }
 0x2e9   :  { %1138 = vmatpush1.bf16.msra.mxu1 %v4220_v5  ;;  %v4326_v5 = vld [vmem:[#allocation2 + $0xa8] sm:$0xff]  }
 0x2ea   :  { %1139 = vmatprep.subr.bf16.mxu1 %v4228_v6  ;;  %v4327_v6 = vld [vmem:[#allocation2 + $0xf0] sm:$0xff]  }
 0x2ed   :  { %1140 = vmatpush1.bf16.msra.mxu1 %v4226_v7  ;;  %v4313_v7 = vld [vmem:[#allocation2 + $0x1b0] sm:$0xff]  }
 0x2ee   :  { %1141 = vmatprep.subr.bf16.mxu1 %v4234_v8  ;;  %v4328_v8 = vld [vmem:[#allocation2 + $0xb0] sm:$0xff]  }
 0x2f1   :  { %1142 = vmatpush1.bf16.msra.mxu1 %v4232_v9  ;;  %v4314_v9 = vld [vmem:[#allocation2 + $0x1b8] sm:$0xff]  }
 0x2f2   :  { %1143 = vmatprep.subr.bf16.mxu1 %v4240_v10  ;;  %v72_v10 = vld [vmem:[%s5009_s1] sm:$0xff] }
 0x2f5   :  { %1144 = vmatpush1.bf16.msra.mxu1 %v4238_v11  ;;  %v1542_v11 = vpack.c.bf16 %v72_v10, %v72_v10 }
 0x2f6   :  { %1145 = vmatprep.subr.bf16.mxu1 %v4246_v12  ;;  %v4329_v12 = vld [vmem:[#allocation2 + $0xf8] sm:$0xff]  }
 0x2f9   :  { %1146 = vmatpush1.bf16.msra.mxu1 %v4244_v13  ;;  %v4330_v13 = vld [vmem:[#allocation2 + $0xb8] sm:$0xff]  }
 0x2fa   :  { %1147 = vmatprep.subr.bf16.mxu1 %v4252_v14  ;;  %v4331_v14 = vld [vmem:[#allocation2 + $0x140] sm:$0xff]  }
 0x2fd   :  { %1148 = vmatpush1.bf16.msra.mxu1 %v4250_v15  ;;  %v3544_v15 = vld [vmem:[%s5014_s6 + $0x4] ss:$8 sm:$0xf] }
 0x2fe   :  { %1149 = vmatprep.subr.bf16.mxu1 %v4258_v16  ;;  %v768_v16 = vsub.s32 3, %v4861_v52 }
 0x301   :  { %1150 = vmatpush1.bf16.msra.mxu1 %v4256_v17  ;;  %v757_v17 = vrot.slane %v3544_v15, %v4864_v53 }
 0x302   :  { %1151 = vmatprep.subr.bf16.mxu1 %v4264_v18  ;;  %v761_v18 = vrot.slane %v3544_v15, %v4870_v55 }
 0x305   :  { %1152 = vmatpush1.bf16.msra.mxu1 %v4262_v19  ;;  %v769_v19 = vrot.slane %v3544_v15, %v768_v16 }
 0x306   :  { %1153 = vmatprep.subr.bf16.mxu1 %v4270_v20 }
 0x309   :  { %1154 = vmatpush1.bf16.msra.mxu1 %v4268_v21 }
 0x30a   :  { %1155 = vmatprep.subr.bf16.mxu1 %v4276_v22 }
 0x30d   :  { %1156 = vmatpush1.bf16.msra.mxu1 %v4274_v23 }
 0x30e   :  { %1157 = vmatprep.subr.bf16.mxu1 %v4282_v24 }
 0x311   :  { %1158 = vmatpush1.bf16.msra.mxu1 %v4280_v25 }
 0x312   :  { %1159 = vmatprep.subr.bf16.mxu1 %v4288_v26 }
 0x315   :  { %1160 = vmatpush1.bf16.msra.mxu1 %v4286_v27 }
 0x316   :  { %1161 = vmatprep.subr.bf16.mxu1 %v4294_v28 }
 0x319   :  { %1162 = vmatpush1.bf16.msra.mxu1 %v4292_v29 }
 0x31a   :  { %1163 = vmatprep.subr.bf16.mxu1 %v4300_v30 }
 0x31d   :  { %1164 = vmatpush1.bf16.msra.mxu1 %v4298_v31  ;;  %v4332_v31 = vld [vmem:[#allocation2 + $0x100] sm:$0xff]  }
 0x31e   :  { %1165 = vmatprep.subr.bf16.mxu1 %v4306_v33  ;;  %v4333_v33 = vld [vmem:[#allocation2 + $0x148] sm:$0xff]  }
 0x321   :  { %1166 = vmatpush1.bf16.msra.mxu1 %v4304_v35  ;;  %v4334_v35 = vld [vmem:[#allocation2 + $0x108] sm:$0xff]  }
 0x322   :  { %4022 = vmatprep.subr.bf16.mxu1 %v4744_v0 }
 0x3b7   :  { %v678_v40 = vpop.f32.mrb[4].mxu1 }
 0x3b8   :  { %v679_v41 = vadd.f32 %v678_v40, %v477_v38  ;;  %v680_v43 = vpop.f32.mrb[5].mxu1  ;;  %v4337_v38 = vld [vmem:[#allocation2 + $0x158] sm:$0xff]   ;;  %v4339_v40 = vld [vmem:[#allocation2 + $0x160] sm:$0xff]  }
 0x3b9   :  { %v681_v44 = vadd.f32 %v680_v43, %v481_v39  ;;  %v682_v45 = vpop.f32.mrb[6].mxu1  ;;  %v4338_v39 = vld [vmem:[#allocation2 + $0x118] sm:$0xff]   ;;  %v4341_v43 = vld [vmem:[#allocation2 + $0x168] sm:$0xff]  }
 0x3ba   :  { %v683_v46 = vpop.f32.mrb[7].mxu1  ;;  %v749_v49 = vpack.c.bf16 %v679_v41, %v679_v41  ;;  %v4340_v41 = vld [vmem:[#allocation2 + $0x120] sm:$0xff]   ;;  %v764_v45 = vsub.s32 2, %v4861_v52 }
 0x3bb   :  { %v750_v47 = vpack.c.bf16 %v681_v44, %v681_v44  ;;  %v4342_v44 = vld [vmem:[#allocation2 + $0x128] sm:$0xff]   ;;  %v4343_v46 = vld [vmem:[#allocation2 + $0x170] sm:$0xff]   ;;  %v4607_v52 = vld [vmem:[#allocation2 + $0x240] sm:$0xff]  }
 0x3bd   :  { %1126 = vmatprep.mubr.bf16.mxu0 %v750_v47  ;;  %1167 = vmatprep.mubr.bf16.mxu1 %v750_v47  ;;  %v4344_v47 = vld [vmem:[#allocation2 + $0x130] sm:$0xff]  }
 0x3be   :  { %1127 = vmatmul.mubr.bf16.vlgmr.msra.gmra.mrb[8].mxu0 %v749_v49  ;;  %1168 = vmatmul.mubr.bf16.vlgmr.msra.gmra.mrb[8].mxu1 %v749_v49  ;;  %v4345_v49 = vld [vmem:[#allocation2 + $0x178] sm:$0xff]  }
 0x3bf   :  { %4023 = vmatpush3.bf16.msra.mxu1 %v4307_v48  ;;  %4038 = vmatprep.mubr.msk.bf16.mxu1 %vm4745_vm0, %v4744_v0  ;;  %v765_v48 = vrot.slane %v3544_v15, %v764_v45 }
 0x3c0   :  { %4024 = vmatprep.subr.bf16.mxu1 %v4744_v0  ;;  %3881 = vmatpush3.bf16.msra.mxu0 %v4316_v50  ;;  %v4346_v50 = vld [vmem:[#allocation2 + $0x138] sm:$0xff]  }
 0x3c1   :  { %3882 = vmatprep.subr.bf16.mxu0 %v4317_v51 }
 0x3c3   :  { %4025 = vmatpush3.bf16.msra.mxu1 %v4308_v54 }
 0x3c4   :  { %4026 = vmatprep.subr.bf16.mxu1 %v4744_v0  ;;  %3883 = vmatpush3.bf16.msra.mxu0 %v4318_v56 }
 0x3c5   :  { %3884 = vmatprep.subr.bf16.mxu0 %v4319_v57 }
 0x3c7   :  { %4027 = vmatpush3.bf16.msra.mxu1 %v4309_v58 }
 0x3c8   :  { %4028 = vmatprep.subr.bf16.mxu1 %v4744_v0  ;;  %3885 = vmatpush3.bf16.msra.mxu0 %v4320_v59  ;;  %v4347_v59 = vld [vmem:[#allocation2 + $0x1c0] sm:$0xff]  }
 0x3c9   :  { %3886 = vmatprep.subr.bf16.mxu0 %v4321_v60 }
 0x3cb   :  { %4029 = vmatpush3.bf16.msra.mxu1 %v4310_v61  ;;  %v4348_v61 = vld [vmem:[#allocation2 + $0x1c8] sm:$0xff]  }
 0x3cc   :  { %4030 = vmatprep.subr.bf16.mxu1 %v4744_v0  ;;  %3887 = vmatpush3.bf16.msra.mxu0 %v4322_v62  ;;  %v4349_v62 = vld [vmem:[#allocation2 + $0x1d0] sm:$0xff]  }
 0x3cd   :  { %3888 = vmatprep.subr.bf16.mxu0 %v4323_v63  ;;  %v4350_v63 = vld [vmem:[#allocation2 + $0x1d8] sm:$0xff]  }
 0x3cf   :  { %4031 = vmatpush3.bf16.msra.mxu1 %v4311_v1  ;;  %v4351_v1 = vld [vmem:[#allocation2 + $0x1e0] sm:$0xff]  }
 0x3d0   :  { %4032 = vmatprep.subr.bf16.mxu1 %v4744_v0  ;;  %3889 = vmatpush3.bf16.msra.mxu0 %v4324_v2  ;;  %v4352_v2 = vld [vmem:[#allocation2 + $0x1e8] sm:$0xff]  }
 0x3d1   :  { %3890 = vmatprep.subr.bf16.mxu0 %v4325_v3  ;;  %v1543_v3 = vld [vmem:[%s5014_s6 + $0x6] ss:$0 sm:$0xff] }
 0x3d3   :  { %4033 = vmatpush3.bf16.msra.mxu1 %v4312_v4  ;;  %v4353_v4 = vld [vmem:[#allocation2 + $0x1f0] sm:$0xff]  }
 0x3d4   :  { %4034 = vmatprep.subr.bf16.mxu1 %v4744_v0  ;;  %3891 = vmatpush3.bf16.msra.mxu0 %v4326_v5 }
 0x3d5   :  { %3892 = vmatprep.subr.bf16.mxu0 %v4327_v6  ;;  %v4354_v6 = vld [vmem:[#allocation2 + $0x1f8] sm:$0xff]  }
 0x3d7   :  { %4035 = vmatpush3.bf16.msra.mxu1 %v4313_v7 }
 0x3d8   :  { %4036 = vmatprep.subr.bf16.mxu1 %v4744_v0  ;;  %3893 = vmatpush3.bf16.msra.mxu0 %v4328_v8 }
 0x3d9   :  { %3894 = vmatprep.subr.bf16.mxu0 %v4329_v12 }
 0x3db   :  { %4037 = vmatpush3.bf16.msra.mxu1 %v4314_v9 }
 0x3dc   :  { %3895 = vmatpush3.bf16.msra.mxu0 %v4330_v13  ;;  %v1244_v13 = vld [vmem:[%s5014_s6 + $0x5] ss:$0 sm:$0xff] }
 0x3dd   :  { %3902 = vmatprep.subr.bf16.mxu0 %v4331_v14 }
 0x3de   :  { %4039 = vmatmul.mubr.bf16.vlgmr.msra.gmra.mrb[12].mxu1 %v1542_v11 }
 0x3df   :  { %1842 = vmatprep.mubr.bf16.mxu1 %v4746_v42 }
 0x491   :  { %v1128_v42 = vpop.f32.mrb[8].mxu0  ;;  %v1169_v20 = vpop.f32.mrb[8].mxu1 }
 0x492   :  { %v1129_v21 = vadd.f32 %v1128_v42, %v757_v17  ;;  %v1130_v22 = vpop.f32.mrb[9].mxu0  ;;  %v1171_v23 = vpop.f32.mrb[9].mxu1  ;;  %v1170_v54 = vadd.f32 %v1169_v20, %v765_v48  ;;  %v4388_v48 = vld [vmem:[#allocation7 + $0x268] ss:$16 sps:$4 sm:$0xff]  }
 0x493   :  { %v1131_v24 = vadd.f32 %v1130_v22, %v761_v18  ;;  %v1172_v25 = vadd.f32 %v1171_v23, %v769_v19  ;;  %v1132_v26 = vpop.f32.mrb[10].mxu0  ;;  %v1173_v27 = vpop.f32.mrb[10].mxu1  ;;  %v4357_v22 = vld [vmem:[#allocation5 + $0x184] ss:$8 sps:$4 sm:$0xff]  }
 0x494   :  { %v1133_v28 = vpop.f32.mrb[11].mxu0  ;;  %v1174_v29 = vpop.f32.mrb[11].mxu1  ;;  %v1240_v32 = vpack.c.bf16 %v1129_v21, %v1129_v21  ;;  %v1242_v60 = vpack.c.bf16 %v1170_v54, %v1170_v54  ;;  %1810 = vmatprep.subr.bf16.mxu1 %v4357_v22  ;;  %v4360_v26 = vld [vmem:[#allocation5 + $0x194] ss:$8 sps:$4 sm:$0xff]   ;;  %v4363_v27 = vld [vmem:[#allocation5 + $0x1a4] ss:$8 sps:$4 sm:$0xff]  }
 0x495   :  { %v1241_v30 = vpack.c.bf16 %v1131_v24, %v1131_v24  ;;  %v1243_v34 = vpack.c.bf16 %v1172_v25, %v1172_v25  ;;  %v4355_v24 = vld [vmem:[#allocation5 + $0x180] ss:$8 sps:$4 sm:$0xff]   ;;  %v4358_v25 = vld [vmem:[#allocation5 + $0x190] ss:$8 sps:$4 sm:$0xff]   ;;  %v4366_v29 = vld [vmem:[#allocation5 + $0x1b4] ss:$8 sps:$4 sm:$0xff]  }
 0x496   :  { %1811 = vmatpush1.bf16.msra.mxu1 %v4355_v24  ;;  %v4361_v28 = vld [vmem:[#allocation5 + $0x1a0] ss:$8 sps:$4 sm:$0xff]   ;;  %v4381_v22 = vld [vmem:[#allocation7 + $0x244] ss:$16 sps:$4 sm:$0xff]  }
 0x497   :  { %1469 = vmatprep.mubr.bf16.mxu0 %v1241_v30  ;;  %1812 = vmatprep.subr.bf16.mxu1 %v4360_v26  ;;  %v4364_v30 = vld [vmem:[#allocation5 + $0x1b0] ss:$8 sps:$4 sm:$0xff]   ;;  %v4387_v24 = vld [vmem:[#allocation7 + $0x264] ss:$16 sps:$4 sm:$0xff]  }
 0x498   :  { %1470 = vmatmul.mubr.bf16.vlgmr.msra.gmra.mrb[12].mxu0 %v1240_v32  ;;  %v4369_v32 = vld [vmem:[#allocation7 + $0x204] ss:$16 sps:$4 sm:$0xff]   ;;  %v4400_v54 = vld [vmem:[#allocation7 + $0x2a8] ss:$16 sps:$4 sm:$0xff]  }
 0x499   :  { %3903 = vmatpush3.bf16.msra.mxu0 %v4332_v31  ;;  %1509 = vmatprep.mubr.bf16.mxu0 %v1243_v34  ;;  %v4372_v34 = vld [vmem:[#allocation7 + $0x20c] ss:$16 sps:$4 sm:$0xff]   ;;  %v4393_v26 = vld [vmem:[#allocation7 + $0x284] ss:$16 sps:$4 sm:$0xff]  }
 0x49a   :  { %3904 = vmatprep.subr.bf16.mxu0 %v4333_v33  ;;  %1813 = vmatpush1.bf16.msra.mxu1 %v4358_v25  ;;  %v4370_v33 = vld [vmem:[#allocation7 + $0x208] ss:$16 sps:$4 sm:$0xff]   ;;  %v4385_v25 = vld [vmem:[#allocation7 + $0x260] ss:$16 sps:$4 sm:$0xff]  }
 0x49b   :  { %1814 = vmatprep.subr.bf16.mxu1 %v4363_v27  ;;  %v4399_v27 = vld [vmem:[#allocation7 + $0x2a4] ss:$16 sps:$4 sm:$0xff]  }
 0x49d   :  { %3905 = vmatpush3.bf16.msra.mxu0 %v4334_v35  ;;  %v4378_v35 = vld [vmem:[#allocation7 + $0x22c] ss:$16 sps:$4 sm:$0xff]  }
 0x49e   :  { %3906 = vmatprep.subr.bf16.mxu0 %v4335_v36  ;;  %1815 = vmatpush1.bf16.msra.mxu1 %v4361_v28  ;;  %v4376_v36 = vld [vmem:[#allocation7 + $0x228] ss:$16 sps:$4 sm:$0xff]   ;;  %v4397_v28 = vld [vmem:[#allocation7 + $0x2a0] ss:$16 sps:$4 sm:$0xff]  }
 0x49f   :  { %1816 = vmatprep.subr.bf16.mxu1 %v4366_v29  ;;  %v4405_v29 = vld [vmem:[#allocation7 + $0x2c4] ss:$16 sps:$4 sm:$0xff]  }
 0x4a1   :  { %3907 = vmatpush3.bf16.msra.mxu0 %v4336_v37  ;;  %v1649_v37 = vld [vmem:[%s5014_s6 + $0x7] ss:$0 sm:$0xff] }
 0x4a2   :  { %3908 = vmatprep.subr.bf16.mxu0 %v4337_v38  ;;  %1817 = vmatpush1.bf16.msra.mxu1 %v4364_v30  ;;  %v4384_v38 = vld [vmem:[#allocation7 + $0x24c] ss:$16 sps:$4 sm:$0xff]   ;;  %v4403_v30 = vld [vmem:[#allocation7 + $0x2c0] ss:$16 sps:$4 sm:$0xff]  }
 0x4a3   :  { %2260 = vmatprep.subr.bf16.mxu1 %v4369_v32  ;;  %v4409_v32 = vld [vmem:[#allocation7 + $0x2e0] ss:$16 sps:$4 sm:$0xff]  }
 0x4a5   :  { %3909 = vmatpush3.bf16.msra.mxu0 %v4338_v39 }
 0x4a6   :  { %3910 = vmatprep.subr.bf16.mxu0 %v4339_v40 }
 0x4a9   :  { %3911 = vmatpush3.bf16.msra.mxu0 %v4340_v41 }
 0x4aa   :  { %3912 = vmatprep.subr.bf16.mxu0 %v4341_v43  ;;  %v4382_v43 = vld [vmem:[#allocation7 + $0x248] ss:$16 sps:$4 sm:$0xff]  }
 0x4ad   :  { %3913 = vmatpush3.bf16.msra.mxu0 %v4342_v44 }
 0x4ae   :  { %3914 = vmatprep.subr.bf16.mxu0 %v4343_v46 }
 0x4b1   :  { %3915 = vmatpush3.bf16.msra.mxu0 %v4344_v47  ;;  %v1626_v51 = vpop.f32.mrb[12].mxu1  ;;  %v4390_v47 = vld [vmem:[#allocation7 + $0x26c] ss:$16 sps:$4 sm:$0xff]  }
 0x4b2   :  { %3916 = vmatprep.subr.bf16.mxu0 %v4345_v49  ;;  %v4040_v56 = vpop.f32.mrb[13].mxu1  ;;  %v1627_v5 = vadd.f32 %v1626_v51, %v1543_v3  ;;  %v4396_v49 = vld [vmem:[#allocation7 + $0x28c] ss:$16 sps:$4 sm:$0xff]  }
 0x4b3   :  { %v1629_v57 = vpop.f32.mrb[14].mxu1  ;;  %v4402_v51 = vld [vmem:[#allocation7 + $0x2ac] ss:$16 sps:$4 sm:$0xff]  }
 0x4b4   :  { %v4041_v58 = vpop.f32.mrb[15].mxu1  ;;  %v1648_v7 = vpack.c.bf16 %v1627_v5, %v1627_v5  ;;  %v4408_v56 = vld [vmem:[#allocation7 + $0x2cc] ss:$16 sps:$4 sm:$0xff]   ;;  %v4406_v57 = vld [vmem:[#allocation7 + $0x2c8] ss:$16 sps:$4 sm:$0xff]  }
 0x4b5   :  { %3917 = vmatpush3.bf16.msra.mxu0 %v4346_v50  ;;  %v4394_v50 = vld [vmem:[#allocation7 + $0x288] ss:$16 sps:$4 sm:$0xff]   ;;  %v4414_v58 = vld [vmem:[#allocation7 + $0x2ec] ss:$16 sps:$4 sm:$0xff]  }
 0x4b6   :  { %4042 = vmatprep.subr.bf16.mxu0 %v4744_v0  ;;  %v4438_v3 = vld [vmem:[#allocation7 + $0x36c] ss:$16 sps:$4 sm:$0xff]  }
 0x4b7   :  { %v4444_v5 = vld [vmem:[#allocation7 + $0x38c] ss:$16 sps:$4 sm:$0xff]  }
 0x4b8   :  { %1510 = vmatmul.mubr.bf16.vlgmr.msra.gmra.mrb[16].mxu0 %v1242_v60  ;;  %v4420_v60 = vld [vmem:[#allocation7 + $0x30c] ss:$16 sps:$4 sm:$0xff]  }
 0x4b9   :  { %4043 = vmatpush3.bf16.msra.mxu0 %v4347_v59  ;;  %4058 = vmatprep.mubr.msk.bf16.mxu0 %vm4745_vm0, %v4744_v0  ;;  %v4412_v59 = vld [vmem:[#allocation7 + $0x2e8] ss:$16 sps:$4 sm:$0xff]  }
 0x4ba   :  { %4044 = vmatprep.subr.bf16.mxu0 %v4744_v0 }
 0x4bd   :  { %4045 = vmatpush3.bf16.msra.mxu0 %v4348_v61  ;;  %v4418_v61 = vld [vmem:[#allocation7 + $0x308] ss:$16 sps:$4 sm:$0xff]  }
 0x4be   :  { %4046 = vmatprep.subr.bf16.mxu0 %v4744_v0 }
 0x4c1   :  { %4047 = vmatpush3.bf16.msra.mxu0 %v4349_v62  ;;  %v4426_v62 = vld [vmem:[#allocation7 + $0x32c] ss:$16 sps:$4 sm:$0xff]  }
 0x4c2   :  { %4048 = vmatprep.subr.bf16.mxu0 %v4744_v0 }
 0x4c5   :  { %4049 = vmatpush3.bf16.msra.mxu0 %v4350_v63  ;;  %v4424_v63 = vld [vmem:[#allocation7 + $0x328] ss:$16 sps:$4 sm:$0xff]  }
 0x4c6   :  { %4050 = vmatprep.subr.bf16.mxu0 %v4744_v0 }
 0x4c9   :  { %4051 = vmatpush3.bf16.msra.mxu0 %v4351_v1  ;;  %v4432_v1 = vld [vmem:[#allocation7 + $0x34c] ss:$16 sps:$4 sm:$0xff]  }
 0x4ca   :  { %4052 = vmatprep.subr.bf16.mxu0 %v4744_v0 }
 0x4cd   :  { %4053 = vmatpush3.bf16.msra.mxu0 %v4352_v2  ;;  %v4430_v2 = vld [vmem:[#allocation7 + $0x348] ss:$16 sps:$4 sm:$0xff]  }
 0x4ce   :  { %4054 = vmatprep.subr.bf16.mxu0 %v4744_v0 }
 0x4d1   :  { %4055 = vmatpush3.bf16.msra.mxu0 %v4353_v4  ;;  %v4436_v4 = vld [vmem:[#allocation7 + $0x368] ss:$16 sps:$4 sm:$0xff]  }
 0x4d2   :  { %4056 = vmatprep.subr.bf16.mxu0 %v4744_v0 }
 0x4d5   :  { %4057 = vmatpush3.bf16.msra.mxu0 %v4354_v6  ;;  %v4442_v6 = vld [vmem:[#allocation7 + $0x388] ss:$16 sps:$4 sm:$0xff]  }
 0x4d6   :  { %2301 = vmatprep.subr.bf16.mxu0 %v4372_v34  ;;  %v4415_v34 = vld [vmem:[#allocation7 + $0x300] ss:$16 sps:$4 sm:$0xff]  }
 0x4d8   :  { %4059 = vmatmul.mubr.bf16.vlgmr.msra.gmra.mrb[20].mxu0 %v1648_v7  ;;  %v4450_v7 = vld [vmem:[#allocation7 + $0x3ac] ss:$16 sps:$4 sm:$0xff]  }
 0x4d9   :  { %2302 = vmatpush1.bf16.msra.mxu0 %v4370_v33  ;;  %v4417_v33 = vld [vmem:[#allocation7 + $0x304] ss:$16 sps:$4 sm:$0xff]  }
 0x4da   :  { %2303 = vmatprep.subr.bf16.mxu0 %v4378_v35  ;;  %v4423_v35 = vld [vmem:[#allocation7 + $0x324] ss:$16 sps:$4 sm:$0xff]  }
 0x4dd   :  { %2304 = vmatpush1.bf16.msra.mxu0 %v4376_v36  ;;  %v4421_v36 = vld [vmem:[#allocation7 + $0x320] ss:$16 sps:$4 sm:$0xff]  }
 0x4de   :  { %2305 = vmatprep.subr.bf16.mxu0 %v4384_v38  ;;  %v4427_v38 = vld [vmem:[#allocation7 + $0x340] ss:$16 sps:$4 sm:$0xff]  }
 0x4e1   :  { %2306 = vmatpush1.bf16.msra.mxu0 %v4382_v43  ;;  %v4439_v43 = vld [vmem:[#allocation7 + $0x380] ss:$16 sps:$4 sm:$0xff]  }
 0x4e2   :  { %2307 = vmatprep.subr.bf16.mxu0 %v4390_v47  ;;  %v4453_v47 = vld [vmem:[#allocation7 + $0x3c4] ss:$16 sps:$4 sm:$0xff]  }
 0x4e5   :  { %2308 = vmatpush1.bf16.msra.mxu0 %v4388_v48  ;;  %v4451_v48 = vld [vmem:[#allocation7 + $0x3c0] ss:$16 sps:$4 sm:$0xff]  }
 0x4e6   :  { %2309 = vmatprep.subr.bf16.mxu0 %v4396_v49  ;;  %v4459_v49 = vld [vmem:[#allocation7 + $0x3e4] ss:$16 sps:$4 sm:$0xff]  }
 0x4e9   :  { %2310 = vmatpush1.bf16.msra.mxu0 %v4394_v50  ;;  %v4462_v50 = vld [vmem:[#allocation7 + $0x3ec] ss:$16 sps:$4 sm:$0xff]  }
 0x4ea   :  { %2311 = vmatprep.subr.bf16.mxu0 %v4402_v51  ;;  %v4457_v51 = vld [vmem:[#allocation7 + $0x3e0] ss:$16 sps:$4 sm:$0xff]  }
 0x4ed   :  { %2312 = vmatpush1.bf16.msra.mxu0 %v4400_v54  ;;  %v4460_v54 = vld [vmem:[#allocation7 + $0x3e8] ss:$16 sps:$4 sm:$0xff]  }
 0x4ee   :  { %2313 = vmatprep.subr.bf16.mxu0 %v4408_v56  ;;  %v4465_v56 = vld [vmem:[#allocation5 + $0x1c4] ss:$8 sps:$4 sm:$0xff]  }
 0x4f1   :  { %2314 = vmatpush1.bf16.msra.mxu0 %v4406_v57  ;;  %v3657_v57 = vld [vmem:[%s5014_s6 + $0x20] ss:$8 sm:$0x3] }
 0x4f2   :  { %2315 = vmatprep.subr.bf16.mxu0 %v4414_v58  ;;  %v1759_v58 = vrot.slane %v3657_v57, %v4864_v53 }
 0x4f5   :  { %2316 = vmatpush1.bf16.msra.mxu0 %v4412_v59  ;;  %v1763_v59 = vrot.slane %v3657_v57, %v4870_v55  ;;  %v4580_v57 = vld [vmem:[#allocation5 + $0x430] ss:$8 sps:$4 sm:$0xff]  }
 0x4f6   :  { %2317 = vmatprep.subr.bf16.mxu0 %v4420_v60 }
 0x4f9   :  { %2318 = vmatpush1.bf16.msra.mxu0 %v4418_v61 }
 0x4fa   :  { %2319 = vmatprep.subr.bf16.mxu0 %v4426_v62 }
 0x4fd   :  { %2320 = vmatpush1.bf16.msra.mxu0 %v4424_v63 }
 0x4fe   :  { %2321 = vmatprep.subr.bf16.mxu0 %v4432_v1 }
 0x501   :  { %2322 = vmatpush1.bf16.msra.mxu0 %v4430_v2 }
 0x502   :  { %2323 = vmatprep.subr.bf16.mxu0 %v4438_v3 }
 0x505   :  { %2324 = vmatpush1.bf16.msra.mxu0 %v4436_v4  ;;  %v4463_v4 = vld [vmem:[#allocation5 + $0x1c0] ss:$8 sps:$4 sm:$0xff]  }
 0x506   :  { %2325 = vmatprep.subr.bf16.mxu0 %v4444_v5 }
 0x509   :  { %2326 = vmatpush1.bf16.msra.mxu0 %v4442_v6  ;;  %v4468_v6 = vld [vmem:[#allocation5 + $0x1d4] ss:$8 sps:$4 sm:$0xff]  }
 0x50a   :  { %2327 = vmatprep.subr.bf16.mxu0 %v4450_v7  ;;  %v4466_v7 = vld [vmem:[#allocation5 + $0x1d0] ss:$8 sps:$4 sm:$0xff]  }
 0x56b   :  { %v3896_v8 = vpop.f32.mrb[12].mxu0 }
 0x56c   :  { %v3897_v9 = vpop.f32.mrb[13].mxu0 }
 0x56d   :  { %v3898_v10 = vadd.f32 %v3897_v9, %v3896_v8  ;;  %v3899_v11 = vpop.f32.mrb[14].mxu0  ;;  %v4448_v8 = vld [vmem:[#allocation7 + $0x3a8] ss:$16 sps:$4 sm:$0xff]   ;;  %v4456_v9 = vld [vmem:[#allocation7 + $0x3cc] ss:$16 sps:$4 sm:$0xff]  }
 0x56e   :  { %v3900_v12 = vpop.f32.mrb[15].mxu0  ;;  %2328 = vmatpush1.bf16.msra.mxu0 %v4448_v8  ;;  %v73_v11 = vld [vmem:[%s5010_s2] sm:$0xff] }
 0x56f   :  { %v1472_v17 = vadd.f32 %v3898_v10, %v1244_v13  ;;  %v4454_v10 = vld [vmem:[#allocation7 + $0x3c8] ss:$16 sps:$4 sm:$0xff]   ;;  %2329 = vmatprep.subr.bf16.mxu0 %v4456_v9  ;;  %v4471_v8 = vld [vmem:[#allocation5 + $0x1e4] ss:$8 sps:$4 sm:$0xff]  }
 0x570   :  { %v4469_v9 = vld [vmem:[#allocation5 + $0x1e0] ss:$8 sps:$4 sm:$0xff]  }
 0x572   :  { %2330 = vmatpush1.bf16.msra.mxu0 %v4454_v10  ;;  %v4474_v10 = vld [vmem:[#allocation5 + $0x1f4] ss:$8 sps:$4 sm:$0xff]  }
 0x573   :  { %2331 = vmatprep.subr.bf16.mxu0 %v4462_v50  ;;  %v4574_v50 = vld [vmem:[#allocation5 + $0x410] ss:$8 sps:$4 sm:$0xff]  }
 0x576   :  { %2332 = vmatpush1.bf16.msra.mxu0 %v4460_v54  ;;  %v4577_v54 = vld [vmem:[#allocation5 + $0x420] ss:$8 sps:$4 sm:$0xff]  }
 0x58b   :  { %v3918_v14 = vpop.f32.mrb[16].mxu0 }
 0x58c   :  { %v3919_v15 = vpop.f32.mrb[17].mxu0 }
 0x58d   :  { %v3920_v18 = vadd.f32 %v3919_v15, %v3918_v14  ;;  %v3921_v19 = vpop.f32.mrb[18].mxu0 }
 0x58e   :  { %v3922_v42 = vpop.f32.mrb[19].mxu0 }
 0x58f   :  { %v4920_v20 = vadd.f32 %v3920_v18, %v1472_v17  ;;  %v4367_v18 = vld [vmem:[#allocation7 + $0x200] ss:$16 sps:$4 sm:$0xff]   ;;  %v4375_v42 = vld [vmem:[#allocation7 + $0x224] ss:$16 sps:$4 sm:$0xff]  }
 0x591   :  { %v1517_v21 = vmul.f32 0.5, %v4920_v20  ;;  %3457 = vst [vmem:[%s5016_s8] sm:$0xff] %v4920_v20 }
 0x593   :  { %v1518_v23 = vmul.f32 1.442695, %v1517_v21  ;;  %v4373_v21 = vld [vmem:[#allocation7 + $0x220] ss:$16 sps:$4 sm:$0xff]  }
 0x595   :  { %4639 = vpow2.f32 %v1518_v23  ;;  %v4379_v23 = vld [vmem:[#allocation7 + $0x240] ss:$16 sps:$4 sm:$0xff]  }
 0x59f   :  { %v4640_v31 = vpop.eup %4639 }
 0x5a0   :  { %1521 = vrot.lane.b32.xlu0 %v4640_v31, %s4747_s17  ;;  %v4411_v31 = vld [vmem:[#allocation7 + $0x2e4] ss:$16 sps:$4 sm:$0xff]  }
 0x5ab   :  { %v1732_v39 = vpop.f32.mrb[20].mxu0 }
 0x5ac   :  { %v1733_v40 = vadd.f32 %v1732_v39, %v1649_v37  ;;  %v4060_v41 = vpop.f32.mrb[21].mxu0  ;;  %v4429_v37 = vld [vmem:[#allocation7 + $0x344] ss:$16 sps:$4 sm:$0xff]  }
 0x5ad   :  { %v1735_v44 = vpop.f32.mrb[22].mxu0  ;;  %v4435_v39 = vld [vmem:[#allocation7 + $0x364] ss:$16 sps:$4 sm:$0xff]  }
 0x5ae   :  { %v4061_v46 = vpop.f32.mrb[23].mxu0  ;;  %1739 = vrot.lane.b32.xlu0 %v1733_v40, %s4748_s19  ;;  %v4433_v40 = vld [vmem:[#allocation7 + $0x360] ss:$16 sps:$4 sm:$0xff]   ;;  %v4441_v41 = vld [vmem:[#allocation7 + $0x384] ss:$16 sps:$4 sm:$0xff]  }
 0x5af   :  { %v4447_v44 = vld [vmem:[#allocation7 + $0x3a4] ss:$16 sps:$4 sm:$0xff]   ;;  %v4445_v46 = vld [vmem:[#allocation7 + $0x3a0] ss:$16 sps:$4 sm:$0xff]  }
 0x612   :  { %v1522_v12 = vpop.permute.xlu0 %1521 }
 0x613   :  { %v1524_v13 = vmul.f32 %v1522_v12, %v73_v11  ;;  %v4472_v11 = vld [vmem:[#allocation5 + $0x1f0] ss:$8 sps:$4 sm:$0xff]   ;;  %v4477_v12 = vld [vmem:[#allocation5 + $0x204] ss:$8 sps:$4 sm:$0xff]  }
 0x615   :  { %v1525_v14 = vadd.f32 %v1524_v13, %v4920_v20  ;;  %v4391_v20 = vld [vmem:[#allocation7 + $0x280] ss:$16 sps:$4 sm:$0xff]  }
 0x616   :  { %v4475_v13 = vld [vmem:[#allocation5 + $0x200] ss:$8 sps:$4 sm:$0xff]  }
 0x620   :  { %v1740_v15 = vpop.permute.xlu0 %1739 }
 0x621   :  { %v1743_v17 = vsel %vm1742_vm1, %v1525_v14, %v1740_v15  ;;  %v4480_v14 = vld [vmem:[#allocation5 + $0x214] ss:$8 sps:$4 sm:$0xff]   ;;  %v4478_v15 = vld [vmem:[#allocation5 + $0x210] ss:$8 sps:$4 sm:$0xff]  }
 0x622   :  { %v1752_v19 = vpack.c.bf16 %v1743_v17, %v1743_v17  ;;  %v4483_v17 = vld [vmem:[#allocation5 + $0x224] ss:$8 sps:$4 sm:$0xff]  }
 0x624   :  { %3666 = vmatmul.mubr.msk.bf16.vlgmr.msra.gmra.mrb[16].mxu1 %vm1806_vm2, %v1752_v19  ;;  %v4486_v19 = vld [vmem:[#allocation5 + $0x234] ss:$8 sps:$4 sm:$0xff]  }
 0x625   :  { %2261 = vmatpush1.bf16.msra.mxu1 %v4367_v18  ;;  %v4481_v18 = vld [vmem:[#allocation5 + $0x220] ss:$8 sps:$4 sm:$0xff]  }
 0x626   :  { %2262 = vmatprep.subr.bf16.mxu1 %v4375_v42  ;;  %v4484_v42 = vld [vmem:[#allocation5 + $0x230] ss:$8 sps:$4 sm:$0xff]  }
 0x629   :  { %2263 = vmatpush1.bf16.msra.mxu1 %v4373_v21  ;;  %v4489_v21 = vld [vmem:[#allocation5 + $0x244] ss:$8 sps:$4 sm:$0xff]  }
 0x62a   :  { %2264 = vmatprep.subr.bf16.mxu1 %v4381_v22  ;;  %v4487_v22 = vld [vmem:[#allocation5 + $0x240] ss:$8 sps:$4 sm:$0xff]  }
 0x62d   :  { %2265 = vmatpush1.bf16.msra.mxu1 %v4379_v23  ;;  %v4492_v23 = vld [vmem:[#allocation5 + $0x254] ss:$8 sps:$4 sm:$0xff]  }
 0x62e   :  { %2266 = vmatprep.subr.bf16.mxu1 %v4387_v24  ;;  %v4490_v24 = vld [vmem:[#allocation5 + $0x250] ss:$8 sps:$4 sm:$0xff]  }
 0x631   :  { %2267 = vmatpush1.bf16.msra.mxu1 %v4385_v25  ;;  %v4495_v25 = vld [vmem:[#allocation5 + $0x264] ss:$8 sps:$4 sm:$0xff]  }
 0x632   :  { %2268 = vmatprep.subr.bf16.mxu1 %v4393_v26  ;;  %v4493_v26 = vld [vmem:[#allocation5 + $0x260] ss:$8 sps:$4 sm:$0xff]  }
 0x635   :  { %2269 = vmatpush1.bf16.msra.mxu1 %v4391_v20  ;;  %v4498_v20 = vld [vmem:[#allocation5 + $0x274] ss:$8 sps:$4 sm:$0xff]  }
 0x636   :  { %2270 = vmatprep.subr.bf16.mxu1 %v4399_v27  ;;  %v4496_v27 = vld [vmem:[#allocation5 + $0x270] ss:$8 sps:$4 sm:$0xff]  }
 0x639   :  { %2271 = vmatpush1.bf16.msra.mxu1 %v4397_v28  ;;  %v4501_v28 = vld [vmem:[#allocation5 + $0x284] ss:$8 sps:$4 sm:$0xff]  }
 0x63a   :  { %2272 = vmatprep.subr.bf16.mxu1 %v4405_v29  ;;  %v4499_v29 = vld [vmem:[#allocation5 + $0x280] ss:$8 sps:$4 sm:$0xff]  }
 0x63d   :  { %2273 = vmatpush1.bf16.msra.mxu1 %v4403_v30  ;;  %v4504_v30 = vld [vmem:[#allocation5 + $0x294] ss:$8 sps:$4 sm:$0xff]  }
 0x63e   :  { %2274 = vmatprep.subr.bf16.mxu1 %v4411_v31  ;;  %v4502_v31 = vld [vmem:[#allocation5 + $0x290] ss:$8 sps:$4 sm:$0xff]  }
 0x641   :  { %2275 = vmatpush1.bf16.msra.mxu1 %v4409_v32  ;;  %v4507_v32 = vld [vmem:[#allocation5 + $0x2a4] ss:$8 sps:$4 sm:$0xff]  }
 0x642   :  { %2276 = vmatprep.subr.bf16.mxu1 %v4417_v33  ;;  %v4505_v33 = vld [vmem:[#allocation5 + $0x2a0] ss:$8 sps:$4 sm:$0xff]  }
 0x645   :  { %2277 = vmatpush1.bf16.msra.mxu1 %v4415_v34  ;;  %v4510_v34 = vld [vmem:[#allocation5 + $0x2b4] ss:$8 sps:$4 sm:$0xff]  }
 0x646   :  { %2278 = vmatprep.subr.bf16.mxu1 %v4423_v35  ;;  %v4508_v35 = vld [vmem:[#allocation5 + $0x2b0] ss:$8 sps:$4 sm:$0xff]  }
 0x649   :  { %2279 = vmatpush1.bf16.msra.mxu1 %v4421_v36  ;;  %v4513_v36 = vld [vmem:[#allocation5 + $0x2c4] ss:$8 sps:$4 sm:$0xff]  }
 0x64a   :  { %2280 = vmatprep.subr.bf16.mxu1 %v4429_v37  ;;  %v4559_v37 = vld [vmem:[#allocation5 + $0x3c0] ss:$8 sps:$4 sm:$0xff]  }
 0x64d   :  { %2281 = vmatpush1.bf16.msra.mxu1 %v4427_v38  ;;  %v4561_v38 = vld [vmem:[#allocation5 + $0x3c4] ss:$8 sps:$4 sm:$0xff]  }
 0x64e   :  { %2282 = vmatprep.subr.bf16.mxu1 %v4435_v39  ;;  %v4564_v39 = vld [vmem:[#allocation5 + $0x3d4] ss:$8 sps:$4 sm:$0xff]   ;;  %3032 = vmatprep.subr.bf16.mxu0 %v4561_v38  ;;  %v4529_v38 = vld [vmem:[#allocation5 + $0x320] ss:$8 sps:$4 sm:$0xff]  }
 0x651   :  { %2283 = vmatpush1.bf16.msra.mxu1 %v4433_v40  ;;  %v4562_v40 = vld [vmem:[#allocation5 + $0x3d0] ss:$8 sps:$4 sm:$0xff]  }
 0x652   :  { %2284 = vmatprep.subr.bf16.mxu1 %v4441_v41  ;;  %v4567_v41 = vld [vmem:[#allocation5 + $0x3e4] ss:$8 sps:$4 sm:$0xff]  }
 0x655   :  { %2285 = vmatpush1.bf16.msra.mxu1 %v4439_v43  ;;  %v4565_v43 = vld [vmem:[#allocation5 + $0x3e0] ss:$8 sps:$4 sm:$0xff]  }
 0x656   :  { %2286 = vmatprep.subr.bf16.mxu1 %v4447_v44  ;;  %v4570_v44 = vld [vmem:[#allocation5 + $0x3f4] ss:$8 sps:$4 sm:$0xff]  }
 0x659   :  { %2287 = vmatpush1.bf16.msra.mxu1 %v4445_v46  ;;  %v4568_v46 = vld [vmem:[#allocation5 + $0x3f0] ss:$8 sps:$4 sm:$0xff]  }
 0x65a   :  { %2288 = vmatprep.subr.bf16.mxu1 %v4453_v47  ;;  %v4573_v47 = vld [vmem:[#allocation5 + $0x404] ss:$8 sps:$4 sm:$0xff]  }
 0x65d   :  { %2289 = vmatpush1.bf16.msra.mxu1 %v4451_v48  ;;  %v4571_v48 = vld [vmem:[#allocation5 + $0x400] ss:$8 sps:$4 sm:$0xff]  }
 0x65e   :  { %2290 = vmatprep.subr.bf16.mxu1 %v4459_v49  ;;  %v4576_v49 = vld [vmem:[#allocation5 + $0x414] ss:$8 sps:$4 sm:$0xff]  }
 0x661   :  { %2291 = vmatpush1.bf16.msra.mxu1 %v4457_v51  ;;  %v4579_v51 = vld [vmem:[#allocation5 + $0x424] ss:$8 sps:$4 sm:$0xff]  }
 0x662   :  { %2743 = vmatprep.subr.bf16.mxu1 %v4465_v56  ;;  %v4582_v56 = vld [vmem:[#allocation5 + $0x434] ss:$8 sps:$4 sm:$0xff]  }
 0x6f7   :  { %v1844_v60 = vpop.f32.mrb[16].mxu1 }
 0x6f8   :  { %v1845_v61 = vadd.f32 %v1844_v60, %v1759_v58  ;;  %v1846_v62 = vpop.f32.mrb[17].mxu1  ;;  %v4585_v58 = vld [vmem:[#allocation5 + $0x444] ss:$8 sps:$4 sm:$0xff]   ;;  %v4588_v60 = vld [vmem:[#allocation5 + $0x454] ss:$8 sps:$4 sm:$0xff]  }
 0x6f9   :  { %v1847_v63 = vadd.f32 %v1846_v62, %v1763_v59  ;;  %v1848_v1 = vpop.f32.mrb[18].mxu1  ;;  %v4583_v59 = vld [vmem:[#allocation5 + $0x440] ss:$8 sps:$4 sm:$0xff]   ;;  %v4591_v62 = vld [vmem:[#allocation5 + $0x464] ss:$8 sps:$4 sm:$0xff]  }
 0x6fa   :  { %v1849_v2 = vpop.f32.mrb[19].mxu1  ;;  %v1915_v5 = vpack.c.bf16 %v1845_v61, %v1845_v61  ;;  %v4586_v61 = vld [vmem:[#allocation5 + $0x450] ss:$8 sps:$4 sm:$0xff]   ;;  %v4594_v1 = vld [vmem:[#allocation5 + $0x474] ss:$8 sps:$4 sm:$0xff]  }
 0x6fb   :  { %v1916_v3 = vpack.c.bf16 %v1847_v63, %v1847_v63  ;;  %v4589_v63 = vld [vmem:[#allocation5 + $0x460] ss:$8 sps:$4 sm:$0xff]   ;;  %v4592_v2 = vld [vmem:[#allocation5 + $0x470] ss:$8 sps:$4 sm:$0xff]  }
 0x6fd   :  { %2292 = vmatprep.mubr.bf16.mxu1 %v1916_v3  ;;  %2333 = vmatprep.mubr.bf16.mxu0 %v1916_v3  ;;  %v4597_v3 = vld [vmem:[#allocation5 + $0x484] ss:$8 sps:$4 sm:$0xff]  }
 0x6fe   :  { %2293 = vmatmul.mubr.bf16.vlgmr.msra.gmra.mrb[20].mxu1 %v1915_v5  ;;  %2334 = vmatmul.mubr.bf16.vlgmr.msra.gmra.mrb[24].mxu0 %v1915_v5  ;;  %v4600_v5 = vld [vmem:[#allocation5 + $0x494] ss:$8 sps:$4 sm:$0xff]  }
 0x6ff   :  { %2744 = vmatpush1.bf16.msra.mxu1 %v4463_v4  ;;  %3033 = vmatpush1.bf16.msra.mxu0 %v4559_v37  ;;  %v4595_v4 = vld [vmem:[#allocation5 + $0x480] ss:$8 sps:$4 sm:$0xff]   ;;  %v4531_v37 = vld [vmem:[#allocation5 + $0x324] ss:$8 sps:$4 sm:$0xff]  }
 0x700   :  { %2745 = vmatprep.subr.bf16.mxu1 %v4468_v6  ;;  %3034 = vmatprep.subr.bf16.mxu0 %v4564_v39  ;;  %v4942_v6 = vld [vmem:[%s5014_s6 + $0x21] ss:$8 sm:$0xf]  ;;  %v4534_v39 = vld [vmem:[#allocation5 + $0x334] ss:$8 sps:$4 sm:$0xff]  }
 0x703   :  { %2746 = vmatpush1.bf16.msra.mxu1 %v4466_v7  ;;  %3035 = vmatpush1.bf16.msra.mxu0 %v4562_v40  ;;  %v4598_v7 = vld [vmem:[#allocation5 + $0x490] ss:$8 sps:$4 sm:$0xff]  }
 0x704   :  { %2747 = vmatprep.subr.bf16.mxu1 %v4471_v8  ;;  %3036 = vmatprep.subr.bf16.mxu0 %v4567_v41  ;;  %v4603_v8 = vld [vmem:[#allocation5 + $0x4a4] ss:$8 sps:$4 sm:$0xff]   ;;  %v4532_v40 = vld [vmem:[#allocation5 + $0x330] ss:$8 sps:$4 sm:$0xff]  }
 0x705   :  { %v4537_v41 = vld [vmem:[#allocation5 + $0x344] ss:$8 sps:$4 sm:$0xff]  }
 0x707   :  { %2748 = vmatpush1.bf16.msra.mxu1 %v4469_v9  ;;  %3037 = vmatpush1.bf16.msra.mxu0 %v4565_v43  ;;  %v1923_v9 = vrot.slane %v4942_v6, %v4864_v53  ;;  %v4535_v43 = vld [vmem:[#allocation5 + $0x340] ss:$8 sps:$4 sm:$0xff]  }
 0x708   :  { %2749 = vmatprep.subr.bf16.mxu1 %v4474_v10  ;;  %3038 = vmatprep.subr.bf16.mxu0 %v4570_v44  ;;  %v1927_v10 = vrot.slane %v4942_v6, %v4870_v55  ;;  %v4540_v44 = vld [vmem:[#allocation5 + $0x354] ss:$8 sps:$4 sm:$0xff]  }
 0x70b   :  { %2750 = vmatpush1.bf16.msra.mxu1 %v4472_v11  ;;  %3039 = vmatpush1.bf16.msra.mxu0 %v4568_v46  ;;  %v1935_v11 = vrot.slane %v4942_v6, %v768_v16  ;;  %v4516_v16 = vld [vmem:[#allocation5 + $0x2d4] ss:$8 sps:$4 sm:$0xff]   ;;  %v4538_v46 = vld [vmem:[#allocation5 + $0x350] ss:$8 sps:$4 sm:$0xff]  }
 0x70c   :  { %2751 = vmatprep.subr.bf16.mxu1 %v4477_v12  ;;  %3040 = vmatprep.subr.bf16.mxu0 %v4573_v47  ;;  %v4601_v12 = vld [vmem:[#allocation5 + $0x4a0] ss:$8 sps:$4 sm:$0xff]   ;;  %v4543_v47 = vld [vmem:[#allocation5 + $0x364] ss:$8 sps:$4 sm:$0xff]  }
 0x70f   :  { %2752 = vmatpush1.bf16.msra.mxu1 %v4475_v13  ;;  %3041 = vmatpush1.bf16.msra.mxu0 %v4571_v48  ;;  %v4541_v48 = vld [vmem:[#allocation5 + $0x360] ss:$8 sps:$4 sm:$0xff]  }
 0x710   :  { %2753 = vmatprep.subr.bf16.mxu1 %v4480_v14  ;;  %3042 = vmatprep.subr.bf16.mxu0 %v4576_v49  ;;  %v4546_v49 = vld [vmem:[#allocation5 + $0x374] ss:$8 sps:$4 sm:$0xff]  }
 0x713   :  { %2754 = vmatpush1.bf16.msra.mxu1 %v4478_v15  ;;  %3043 = vmatpush1.bf16.msra.mxu0 %v4574_v50  ;;  %v4544_v50 = vld [vmem:[#allocation5 + $0x370] ss:$8 sps:$4 sm:$0xff]  }
 0x714   :  { %2755 = vmatprep.subr.bf16.mxu1 %v4483_v17  ;;  %3044 = vmatprep.subr.bf16.mxu0 %v4579_v51  ;;  %v4549_v51 = vld [vmem:[#allocation5 + $0x384] ss:$8 sps:$4 sm:$0xff]  }
 0x717   :  { %2756 = vmatpush1.bf16.msra.mxu1 %v4481_v18  ;;  %3045 = vmatpush1.bf16.msra.mxu0 %v4577_v54  ;;  %v4547_v54 = vld [vmem:[#allocation5 + $0x380] ss:$8 sps:$4 sm:$0xff]  }
 0x718   :  { %2757 = vmatprep.subr.bf16.mxu1 %v4486_v19  ;;  %3046 = vmatprep.subr.bf16.mxu0 %v4582_v56  ;;  %v4552_v56 = vld [vmem:[#allocation5 + $0x394] ss:$8 sps:$4 sm:$0xff]  }
 0x71b   :  { %2758 = vmatpush1.bf16.msra.mxu1 %v4484_v42  ;;  %3047 = vmatpush1.bf16.msra.mxu0 %v4580_v57  ;;  %v4550_v57 = vld [vmem:[#allocation5 + $0x390] ss:$8 sps:$4 sm:$0xff]  }
 0x71c   :  { %2759 = vmatprep.subr.bf16.mxu1 %v4489_v21  ;;  %3048 = vmatprep.subr.bf16.mxu0 %v4585_v58  ;;  %v4555_v58 = vld [vmem:[#allocation5 + $0x3a4] ss:$8 sps:$4 sm:$0xff]  }
 0x71f   :  { %2760 = vmatpush1.bf16.msra.mxu1 %v4487_v22  ;;  %3049 = vmatpush1.bf16.msra.mxu0 %v4583_v59  ;;  %v4553_v59 = vld [vmem:[#allocation5 + $0x3a0] ss:$8 sps:$4 sm:$0xff]  }
 0x720   :  { %2761 = vmatprep.subr.bf16.mxu1 %v4492_v23  ;;  %3050 = vmatprep.subr.bf16.mxu0 %v4588_v60  ;;  %v1931_v60 = vrot.slane %v4942_v6, %v764_v45  ;;  %v3732_v45 = vld [vmem:[%s5014_s6 + $0x22] ss:$8 sm:$0x3] }
 0x723   :  { %2762 = vmatpush1.bf16.msra.mxu1 %v4490_v24  ;;  %3051 = vmatpush1.bf16.msra.mxu0 %v4586_v61  ;;  %v4558_v61 = vld [vmem:[#allocation5 + $0x3b4] ss:$8 sps:$4 sm:$0xff]  }
 0x724   :  { %2763 = vmatprep.subr.bf16.mxu1 %v4495_v25  ;;  %3052 = vmatprep.subr.bf16.mxu0 %v4591_v62  ;;  %v4556_v62 = vld [vmem:[#allocation5 + $0x3b0] ss:$8 sps:$4 sm:$0xff]  }
 0x727   :  { %2764 = vmatpush1.bf16.msra.mxu1 %v4493_v26  ;;  %3053 = vmatpush1.bf16.msra.mxu0 %v4589_v63  ;;  %v4511_v26 = vld [vmem:[#allocation5 + $0x2c0] ss:$8 sps:$4 sm:$0xff]  }
 0x728   :  { %2765 = vmatprep.subr.bf16.mxu1 %v4498_v20  ;;  %3054 = vmatprep.subr.bf16.mxu0 %v4594_v1 }
 0x72b   :  { %2766 = vmatpush1.bf16.msra.mxu1 %v4496_v27  ;;  %3055 = vmatpush1.bf16.msra.mxu0 %v4592_v2  ;;  %v4606_v2 = vld [vmem:[#allocation5 + $0x4b4] ss:$8 sps:$4 sm:$0xff]  }
 0x72c   :  { %2767 = vmatprep.subr.bf16.mxu1 %v4501_v28  ;;  %3056 = vmatprep.subr.bf16.mxu0 %v4597_v3  ;;  %v4514_v28 = vld [vmem:[#allocation5 + $0x2d0] ss:$8 sps:$4 sm:$0xff]  }
 0x72d   :  { %v4604_v3 = vld [vmem:[#allocation5 + $0x4b0] ss:$8 sps:$4 sm:$0xff]  }
 0x72f   :  { %2768 = vmatpush1.bf16.msra.mxu1 %v4499_v29  ;;  %3057 = vmatpush1.bf16.msra.mxu0 %v4595_v4  ;;  %v4519_v29 = vld [vmem:[#allocation5 + $0x2e4] ss:$8 sps:$4 sm:$0xff]   ;;  %v2416_v4 = vrot.slane %v3732_v45, %v4864_v53 }
 0x730   :  { %2769 = vmatprep.subr.bf16.mxu1 %v4504_v30  ;;  %3058 = vmatprep.subr.bf16.mxu0 %v4600_v5  ;;  %v4517_v30 = vld [vmem:[#allocation5 + $0x2e0] ss:$8 sps:$4 sm:$0xff]   ;;  %v2420_v5 = vrot.slane %v3732_v45, %v4870_v55 }
 0x733   :  { %2770 = vmatpush1.bf16.msra.mxu1 %v4502_v31  ;;  %3059 = vmatpush1.bf16.msra.mxu0 %v4598_v7  ;;  %v4522_v31 = vld [vmem:[#allocation5 + $0x2f4] ss:$8 sps:$4 sm:$0xff]  }
 0x734   :  { %2771 = vmatprep.subr.bf16.mxu1 %v4507_v32  ;;  %3060 = vmatprep.subr.bf16.mxu0 %v4603_v8  ;;  %v4520_v32 = vld [vmem:[#allocation5 + $0x2f0] ss:$8 sps:$4 sm:$0xff]  }
 0x737   :  { %2772 = vmatpush1.bf16.msra.mxu1 %v4505_v33  ;;  %3061 = vmatpush1.bf16.msra.mxu0 %v4601_v12  ;;  %v4525_v33 = vld [vmem:[#allocation5 + $0x304] ss:$8 sps:$4 sm:$0xff]  }
 0x738   :  { %2773 = vmatprep.subr.bf16.mxu1 %v4510_v34  ;;  %v4523_v34 = vld [vmem:[#allocation5 + $0x300] ss:$8 sps:$4 sm:$0xff]   ;;  %3062 = vmatprep.subr.bf16.mxu0 %v4606_v2  ;;  %v4638_v2 = vld [vmem:[#allocation2 + $0x2f8] sm:$0xff]  }
 0x73b   :  { %2774 = vmatpush1.bf16.msra.mxu1 %v4508_v35  ;;  %v4528_v35 = vld [vmem:[#allocation5 + $0x314] ss:$8 sps:$4 sm:$0xff]   ;;  %3063 = vmatpush1.bf16.msra.mxu0 %v4604_v3  ;;  %v3261_v3 = vld [vmem:[%s5014_s6 + $0x25] ss:$0 sm:$0xff] }
 0x73c   :  { %2784 = vmatprep.subr.bf16.mxu1 %v4513_v36  ;;  %v4526_v36 = vld [vmem:[#allocation5 + $0x310] ss:$8 sps:$4 sm:$0xff]   ;;  %3942 = vmatprep.subr.bf16.mxu0 %v4607_v52 }
 0x7d1   :  { %v2294_v13 = vpop.f32.mrb[20].mxu1  ;;  %v4951_v14 = vpop.f32.mrb[24].mxu0 }
 0x7d2   :  { %v2295_v15 = vadd.f32 %v2294_v13, %v1923_v9  ;;  %v2296_v17 = vpop.f32.mrb[21].mxu1  ;;  %v2337_v18 = vpop.f32.mrb[25].mxu0  ;;  %v2336_v63 = vadd.f32 %v4951_v14, %v1931_v60  ;;  %v4608_v13 = vld [vmem:[#allocation2 + $0x200] sm:$0xff]  }
 0x7d3   :  { %v2297_v19 = vadd.f32 %v2296_v17, %v1927_v10  ;;  %v2338_v42 = vadd.f32 %v2337_v18, %v1935_v11  ;;  %v2298_v21 = vpop.f32.mrb[22].mxu1  ;;  %v2339_v22 = vpop.f32.mrb[26].mxu0  ;;  %v4610_v17 = vld [vmem:[#allocation2 + $0x208] sm:$0xff]   ;;  %v4611_v18 = vld [vmem:[#allocation2 + $0x250] sm:$0xff]  }
 0x7d4   :  { %v2299_v23 = vpop.f32.mrb[23].mxu1  ;;  %v2340_v24 = vpop.f32.mrb[27].mxu0  ;;  %v2406_v20 = vpack.c.bf16 %v2295_v15, %v2295_v15  ;;  %v2408_v1 = vpack.c.bf16 %v2336_v63, %v2336_v63  ;;  %v4609_v15 = vld [vmem:[#allocation2 + $0x248] sm:$0xff]   ;;  %v4614_v21 = vld [vmem:[#allocation2 + $0x218] sm:$0xff]   ;;  %v4615_v22 = vld [vmem:[#allocation2 + $0x260] sm:$0xff]  }
 0x7d5   :  { %v2407_v25 = vpack.c.bf16 %v2297_v19, %v2297_v19  ;;  %v2409_v27 = vpack.c.bf16 %v2338_v42, %v2338_v42  ;;  %v4612_v19 = vld [vmem:[#allocation2 + $0x210] sm:$0xff]   ;;  %v4613_v42 = vld [vmem:[#allocation2 + $0x258] sm:$0xff]   ;;  %v4616_v23 = vld [vmem:[#allocation2 + $0x220] sm:$0xff]  }
 0x7d6   :  { %v4617_v24 = vld [vmem:[#allocation2 + $0x268] sm:$0xff]  }
 0x7d7   :  { %2775 = vmatprep.mubr.bf16.mxu1 %v2407_v25  ;;  %v4618_v25 = vld [vmem:[#allocation2 + $0x228] sm:$0xff]  }
 0x7d8   :  { %2776 = vmatmul.mubr.bf16.vlgmr.msra.gmra.mrb[24].mxu1 %v2406_v20  ;;  %v4620_v20 = vld [vmem:[#allocation2 + $0x230] sm:$0xff]  }
 0x7d9   :  { %2785 = vmatpush1.bf16.msra.mxu1 %v4511_v26  ;;  %2816 = vmatprep.mubr.bf16.mxu1 %v2409_v27  ;;  %v4619_v26 = vld [vmem:[#allocation2 + $0x270] sm:$0xff]   ;;  %v4622_v27 = vld [vmem:[#allocation2 + $0x238] sm:$0xff]  }
 0x7da   :  { %2786 = vmatprep.subr.bf16.mxu1 %v4516_v16  ;;  %v4621_v16 = vld [vmem:[#allocation2 + $0x278] sm:$0xff]  }
 0x7dd   :  { %2787 = vmatpush1.bf16.msra.mxu1 %v4514_v28  ;;  %v3797_v28 = vld [vmem:[%s5014_s6 + $0x23] ss:$8 sm:$0x3] }
 0x7de   :  { %2788 = vmatprep.subr.bf16.mxu1 %v4519_v29  ;;  %v2865_v29 = vrot.slane %v3797_v28, %v4864_v53  ;;  %v4625_v53 = vld [vmem:[#allocation2 + $0x290] sm:$0xff]  }
 0x7e1   :  { %2789 = vmatpush1.bf16.msra.mxu1 %v4517_v30  ;;  %v2869_v30 = vrot.slane %v3797_v28, %v4870_v55  ;;  %v4626_v55 = vld [vmem:[#allocation2 + $0x298] sm:$0xff]  }
 0x7e2   :  { %2790 = vmatprep.subr.bf16.mxu1 %v4522_v31 }
 0x7e5   :  { %2791 = vmatpush1.bf16.msra.mxu1 %v4520_v32 }
 0x7e6   :  { %2792 = vmatprep.subr.bf16.mxu1 %v4525_v33 }
 0x7e9   :  { %2793 = vmatpush1.bf16.msra.mxu1 %v4523_v34 }
 0x7ea   :  { %2794 = vmatprep.subr.bf16.mxu1 %v4528_v35 }
 0x7ed   :  { %2795 = vmatpush1.bf16.msra.mxu1 %v4526_v36 }
 0x7ee   :  { %2796 = vmatprep.subr.bf16.mxu1 %v4531_v37 }
 0x7f1   :  { %2797 = vmatpush1.bf16.msra.mxu1 %v4529_v38  ;;  %v4623_v38 = vld [vmem:[#allocation2 + $0x280] sm:$0xff]  }
 0x7f2   :  { %2798 = vmatprep.subr.bf16.mxu1 %v4534_v39 }
 0x7f5   :  { %2799 = vmatpush1.bf16.msra.mxu1 %v4532_v40  ;;  %v4624_v40 = vld [vmem:[#allocation2 + $0x288] sm:$0xff]  }
 0x7f6   :  { %2800 = vmatprep.subr.bf16.mxu1 %v4537_v41  ;;  %v4627_v41 = vld [vmem:[#allocation2 + $0x2a0] sm:$0xff]  }
 0x7f9   :  { %2801 = vmatpush1.bf16.msra.mxu1 %v4535_v43  ;;  %v4628_v43 = vld [vmem:[#allocation2 + $0x2a8] sm:$0xff]  }
 0x7fa   :  { %2802 = vmatprep.subr.bf16.mxu1 %v4540_v44  ;;  %v4629_v44 = vld [vmem:[#allocation2 + $0x2b0] sm:$0xff]  }
 0x7fd   :  { %2803 = vmatpush1.bf16.msra.mxu1 %v4538_v46  ;;  %v4630_v46 = vld [vmem:[#allocation2 + $0x2b8] sm:$0xff]  }
 0x7fe   :  { %2804 = vmatprep.subr.bf16.mxu1 %v4543_v47  ;;  %v4631_v47 = vld [vmem:[#allocation2 + $0x2c0] sm:$0xff]  }
 0x801   :  { %2805 = vmatpush1.bf16.msra.mxu1 %v4541_v48  ;;  %v4632_v48 = vld [vmem:[#allocation2 + $0x2c8] sm:$0xff]  }
 0x802   :  { %2806 = vmatprep.subr.bf16.mxu1 %v4546_v49  ;;  %v4633_v49 = vld [vmem:[#allocation2 + $0x2d0] sm:$0xff]  }
 0x805   :  { %2807 = vmatpush1.bf16.msra.mxu1 %v4544_v50  ;;  %v4634_v50 = vld [vmem:[#allocation2 + $0x2d8] sm:$0xff]  }
 0x806   :  { %2808 = vmatprep.subr.bf16.mxu1 %v4549_v51  ;;  %v4635_v51 = vld [vmem:[#allocation2 + $0x2e0] sm:$0xff]  }
 0x809   :  { %2809 = vmatpush1.bf16.msra.mxu1 %v4547_v54  ;;  %v4636_v54 = vld [vmem:[#allocation2 + $0x2e8] sm:$0xff]  }
 0x80a   :  { %2810 = vmatprep.subr.bf16.mxu1 %v4552_v56  ;;  %v4637_v56 = vld [vmem:[#allocation2 + $0x2f0] sm:$0xff]  }
 0x80d   :  { %2811 = vmatpush1.bf16.msra.mxu1 %v4550_v57 }
 0x80e   :  { %2812 = vmatprep.subr.bf16.mxu1 %v4555_v58  ;;  %v3107_v58 = vld [vmem:[%s5014_s6 + $0x24] ss:$0 sm:$0xff] }
 0x811   :  { %2813 = vmatpush1.bf16.msra.mxu1 %v4553_v59 }
 0x812   :  { %2814 = vmatprep.subr.bf16.mxu1 %v4558_v61 }
 0x815   :  { %2815 = vmatpush1.bf16.msra.mxu1 %v4556_v62 }
 0x816   :  { %4082 = vmatprep.subr.bf16.mxu1 %v4744_v0 }
 0x818   :  { %2817 = vmatmul.mubr.bf16.vlgmr.msra.gmra.mrb[24].mxu1 %v2408_v1 }
 0x819   :  { %4098 = vmatprep.mubr.msk.bf16.mxu1 %vm4745_vm0, %v4744_v0  ;;  %4083 = vmatpush3.bf16.msra.mxu1 %v4631_v47 }
 0x81a   :  { %4084 = vmatprep.subr.bf16.mxu1 %v4744_v0 }
 0x81d   :  { %4085 = vmatpush3.bf16.msra.mxu1 %v4632_v48 }
 0x81e   :  { %4086 = vmatprep.subr.bf16.mxu1 %v4744_v0 }
 0x821   :  { %4087 = vmatpush3.bf16.msra.mxu1 %v4633_v49 }
 0x822   :  { %4088 = vmatprep.subr.bf16.mxu1 %v4744_v0 }
 0x825   :  { %4089 = vmatpush3.bf16.msra.mxu1 %v4634_v50 }
 0x826   :  { %4090 = vmatprep.subr.bf16.mxu1 %v4744_v0 }
 0x829   :  { %4091 = vmatpush3.bf16.msra.mxu1 %v4635_v51 }
 0x82a   :  { %4092 = vmatprep.subr.bf16.mxu1 %v4744_v0 }
 0x82d   :  { %4093 = vmatpush3.bf16.msra.mxu1 %v4636_v54 }
 0x82e   :  { %4094 = vmatprep.subr.bf16.mxu1 %v4744_v0 }
 0x831   :  { %4095 = vmatpush3.bf16.msra.mxu1 %v4637_v56 }
 0x832   :  { %4096 = vmatprep.subr.bf16.mxu1 %v4744_v0 }
 0x835   :  { %4097 = vmatpush3.bf16.msra.mxu1 %v4638_v2 }
 0x8eb   :  { %v2818_v6 = vpop.f32.mrb[24].mxu1 }
 0x8ec   :  { %v4102_v7 = vadd.f32 %v2818_v6, %v2416_v4  ;;  %v2820_v8 = vpop.f32.mrb[25].mxu1 }
 0x8ed   :  { %v4103_v9 = vadd.f32 %v2820_v8, %v2420_v5  ;;  %v2822_v10 = vpop.f32.mrb[26].mxu1 }
 0x8ee   :  { %v2823_v11 = vpop.f32.mrb[27].mxu1  ;;  %v2857_v14 = vpack.c.bf16 %v4102_v7, %v4102_v7  ;;  %v3367_v7 = vld [vmem:[%s5014_s6 + $0x26] ss:$0 sm:$0xff] }
 0x8ef   :  { %v2858_v12 = vpack.c.bf16 %v4103_v9, %v4103_v9 }
 0x8f1   :  { %3064 = vmatprep.mubr.bf16.mxu0 %v2858_v12 }
 0x8f2   :  { %3065 = vmatmul.mubr.bf16.vlgmr.msra.gmra.mrb[28].mxu0 %v2857_v14 }
 0x8f3   :  { %3943 = vmatpush3.bf16.msra.mxu0 %v4608_v13 }
 0x8f4   :  { %3944 = vmatprep.subr.bf16.mxu0 %v4609_v15 }
 0x8f7   :  { %3945 = vmatpush3.bf16.msra.mxu0 %v4610_v17 }
 0x8f8   :  { %3946 = vmatprep.subr.bf16.mxu0 %v4611_v18 }
 0x8fb   :  { %3947 = vmatpush3.bf16.msra.mxu0 %v4612_v19 }
 0x8fc   :  { %3948 = vmatprep.subr.bf16.mxu0 %v4613_v42 }
 0x8ff   :  { %3949 = vmatpush3.bf16.msra.mxu0 %v4614_v21 }
 0x900   :  { %3950 = vmatprep.subr.bf16.mxu0 %v4615_v22 }
 0x903   :  { %3951 = vmatpush3.bf16.msra.mxu0 %v4616_v23 }
 0x904   :  { %3952 = vmatprep.subr.bf16.mxu0 %v4617_v24 }
 0x907   :  { %3953 = vmatpush3.bf16.msra.mxu0 %v4618_v25 }
 0x908   :  { %3954 = vmatprep.subr.bf16.mxu0 %v4619_v26 }
 0x90b   :  { %3955 = vmatpush3.bf16.msra.mxu0 %v4620_v20 }
 0x90c   :  { %3956 = vmatprep.subr.bf16.mxu0 %v4621_v16 }
 0x90f   :  { %3957 = vmatpush3.bf16.msra.mxu0 %v4622_v27 }
 0x910   :  { %4062 = vmatprep.subr.bf16.mxu0 %v4744_v0 }
 0x9c5   :  { %v3066_v31 = vpop.f32.mrb[28].mxu0 }
 0x9c6   :  { %v3067_v32 = vadd.f32 %v3066_v31, %v2865_v29  ;;  %v3068_v33 = vpop.f32.mrb[29].mxu0 }
 0x9c7   :  { %v3069_v34 = vadd.f32 %v3068_v33, %v2869_v30  ;;  %v3070_v35 = vpop.f32.mrb[30].mxu0 }
 0x9c8   :  { %v3071_v36 = vpop.f32.mrb[31].mxu0  ;;  %v3105_v39 = vpack.c.bf16 %v3067_v32, %v3067_v32 }
 0x9c9   :  { %v3106_v37 = vpack.c.bf16 %v3069_v34, %v3069_v34 }
 0x9cb   :  { %3236 = vmatprep.mubr.bf16.mxu0 %v3106_v37 }
 0x9cc   :  { %3237 = vmatmul.mubr.bf16.vlgmr.msra.gmra.mrb[32].mxu0 %v3105_v39 }
 0x9cd   :  { %4063 = vmatpush3.bf16.msra.mxu0 %v4623_v38  ;;  %4078 = vmatprep.mubr.msk.bf16.mxu0 %vm4745_vm0, %v4744_v0 }
 0x9ce   :  { %4064 = vmatprep.subr.bf16.mxu0 %v4744_v0 }
 0x9d1   :  { %4065 = vmatpush3.bf16.msra.mxu0 %v4624_v40 }
 0x9d2   :  { %4066 = vmatprep.subr.bf16.mxu0 %v4744_v0 }
 0x9d5   :  { %4067 = vmatpush3.bf16.msra.mxu0 %v4625_v53 }
 0x9d6   :  { %4068 = vmatprep.subr.bf16.mxu0 %v4744_v0 }
 0x9d9   :  { %4069 = vmatpush3.bf16.msra.mxu0 %v4626_v55 }
 0x9da   :  { %4070 = vmatprep.subr.bf16.mxu0 %v4744_v0 }
 0x9dd   :  { %4071 = vmatpush3.bf16.msra.mxu0 %v4627_v41 }
 0x9de   :  { %4072 = vmatprep.subr.bf16.mxu0 %v4744_v0 }
 0x9e1   :  { %4073 = vmatpush3.bf16.msra.mxu0 %v4628_v43 }
 0x9e2   :  { %4074 = vmatprep.subr.bf16.mxu0 %v4744_v0 }
 0x9e5   :  { %4075 = vmatpush3.bf16.msra.mxu0 %v4629_v44 }
 0x9e6   :  { %4076 = vmatprep.subr.bf16.mxu0 %v4744_v0 }
 0x9e9   :  { %4077 = vmatpush3.bf16.msra.mxu0 %v4630_v46 }
 0xa9f   :  { %v3958_v57 = vpop.f32.mrb[32].mxu0 }
 0xaa0   :  { %v3959_v59 = vpop.f32.mrb[33].mxu0 }
 0xaa1   :  { %v3960_v60 = vadd.f32 %v3959_v59, %v3958_v57  ;;  %v3961_v61 = vpop.f32.mrb[34].mxu0 }
 0xaa2   :  { %v3962_v62 = vpop.f32.mrb[35].mxu0 }
 0xaa3   :  { %v3239_v63 = vadd.f32 %v3960_v60, %v3107_v58 }
 0xaa5   :  { %v3260_v1 = vpack.c.bf16 %v3239_v63, %v3239_v63 }
 0xaa7   :  { %4079 = vmatmul.mubr.bf16.vlgmr.msra.gmra.mrb[36].mxu0 %v3260_v1 }
 0xb7a   :  { %v3344_v52 = vpop.f32.mrb[36].mxu0 }
 0xb7b   :  { %v3345_v0 = vadd.f32 %v3344_v52, %v3261_v3  ;;  %v4080_v45 = vpop.f32.mrb[37].mxu0 }
 0xb7c   :  { %v3347_v4 = vpop.f32.mrb[38].mxu0 }
 0xb7d   :  { %v3366_v5 = vpack.c.bf16 %v3345_v0, %v3345_v0  ;;  %v4081_v6 = vpop.f32.mrb[39].mxu0 }
 0xb7f   :  { %4099 = vmatmul.mubr.bf16.vlgmr.msra.gmra.mrb[28].mxu1 %v3366_v5 }
 0xc52   :  { %v3450_v8 = vpop.f32.mrb[28].mxu1 }
 0xc53   :  { %v3451_v9 = vadd.f32 %v3450_v8, %v3367_v7  ;;  %v4100_v10 = vpop.f32.mrb[29].mxu1 }
 0xc54   :  { %v3453_v11 = vpop.f32.mrb[30].mxu1 }
 0xc55   :  { %3456 = vst [vmem:[#allocation8] sm:$0xff] %v3451_v9  ;;  %v4101_v12 = vpop.f32.mrb[31].mxu1 }
 0xc56   :  { %4718 = shalt.err (!%p4715_p0)
}
 0xc57   :  { %s4719_s6 = scalar_lea.hbm %s5015_s7, 128 }
 0xc58   :  { %p4720_p1 = scmp.ne.s32.totalorder %s5015_s7, %s4719_s6  ;;  %p4723_p2 = scmp.lt.u32.totalorder %s4719_s6, %s5015_s7 }
 0xc5a   :  { %p4725_p3 = pnand %p4723_p2, %p4720_p1 }
 0xc5c   :  { %4728 = shalt.err (!%p4725_p3)
}
 0xc5d   :  { %3467 = dma.vmem_to_hbm [thread:$0]  %s3465_s10, 128, %s5015_s7, [#allocation4]  }
 0xc5e   :  { %4733 = dma.done.wait [#allocation4], 128  }
 0xc5f   :  { %4734 = vsyncadd [#allocation4], 4294967168 }
 0xc60   :  { %3475 = vsyncpa [#allocation3], 1 }
 0xc61   :  { %3476 = vsyncpa [#allocation6], 1 }
 0xc62   :  { %3477 = vsyncpa [#allocation4], 1 }

</bundles_post_ra>
